<compile_context>
chip_gen: v5e
topology: v5e:2x2
jax: 0.10.0
libtpu: 0.0.40
codegen_flags: <defaults>
</compile_context>

<pallas_src>
import functools

import jax
import jax.numpy as jnp
import numpy as np
from jax.experimental import pallas as pl
from jax.experimental.pallas import tpu as pltpu


def polarnet_kernel(x_ref, params_ref, b2_ref, o_ref, *, use_bf16):
    """One grid step processes an (8, T) slab of the batch.

    x_ref:      (2, 8, T) VMEM  -- x_ref[0] = x coords, x_ref[1] = y coords.
    params_ref: (4, H)    SMEM  -- rows = [W1[:,0], W1[:,1], b1, W2[0,:]].
    b2_ref:     (1, 1)    SMEM  -- output-layer bias (scalar).
    o_ref:      (8, T)    VMEM  -- sigmoid output, fully sublane/lane dense.
    """
    xc = x_ref[0]                               # (8, T)
    yc = x_ref[1]                               # (8, T)

    # cartesian -> polar (EUP transcendentals at full vreg density).
    r = jnp.sqrt(xc * xc + yc * yc)             # (8, T) f32
    a = jnp.arctan2(yc, xc)                     # (8, T) f32

    num_hid = params_ref.shape[1]
    acc = jnp.zeros_like(r)                     # running f32 logit accumulator

    # Hidden layer: K=2 contraction -> per-hidden-unit scalar broadcasts on
    # the VPU (an MXU matmul would be <1% utilized).  The 1-wide output layer
    # is accumulated on the fly, so no (H, 8, T) hid is ever materialized.
    # H is small and static -> fully unrolled.
    for hh in range(num_hid):
        w1r = params_ref[0, hh]
        w1a = params_ref[1, hh]
        b1h = params_ref[2, hh]
        w2h = params_ref[3, hh]
        pre = w1r * r + w1a * a + b1h           # f32 VPU (scalar broadcasts)
        if use_bf16:
            # v6e/v7x: bf16 EUP roughly doubles tanh throughput (the dominant
            # cost); accumulation stays in f32.
            hid = jnp.tanh(pre.astype(jnp.bfloat16)).astype(jnp.float32)
        else:
            hid = jnp.tanh(pre)                 # f32 EUP (v5e path)
        acc = acc + w2h * hid

    o_ref[...] = jax.nn.sigmoid(acc + b2_ref[0, 0])   # (8, T) dense store


@functools.partial(jax.jit, static_argnames=("block_n", "use_bf16"))
def polarnet_forward(x, w1, b1, w2, b2, *, block_n=8192, use_bf16=False):
    """x: (N, 2); w1: (H, 2); b1: (H,); w2: (1, H); b2: (1,). Returns (N, 1)."""
    n = x.shape[0]
    h = w1.shape[0]

    # One grid step = an 8-sublane x t_lanes-lane slab (t_lanes % 128 == 0).
    min_tile = 8 * 128                                   # 1024 batch elems
    block = max(min_tile, (block_n // min_tile) * min_tile)
    # Cap the tile so tiny batches are not padded to a huge tile and so the
    # grid has >= 2 steps once n > min_tile (keeps both v7x TCs busy).
    tile = max(min_tile, min(block, pl.cdiv(n, 2 * min_tile) * min_tile))
    n_pad = pl.cdiv(n, tile) * tile
    t_lanes = tile // 8
    rows = n_pad // t_lanes                              # = 8 * num_grid_steps

    # Kernel-friendly layouts (one fused XLA transpose/pad/reshape; the kernel
    # is EUP-bound so this glue is off the critical slot).
    x_t = x.astype(jnp.float32).T                        # (2, N)
    if n_pad != n:
        x_t = jnp.pad(x_t, ((0, 0), (0, n_pad - n)))     # zeros: atan2(0,0)=0
    x_slab = x_t.reshape(2, rows, t_lanes)

    w1f = w1.astype(jnp.float32)
    params = jnp.stack(
        [w1f[:, 0], w1f[:, 1],
         b1.reshape(-1).astype(jnp.float32),
         w2.reshape(-1).astype(jnp.float32)], axis=0)    # (4, H) -> SMEM
    b2s = b2.reshape(1, 1).astype(jnp.float32)           # (1, 1) -> SMEM

    grid = (n_pad // tile,)
    kernel = functools.partial(polarnet_kernel, use_bf16=use_bf16)

    out = pl.pallas_call(
        kernel,
        out_shape=jax.ShapeDtypeStruct((rows, t_lanes), jnp.float32),
        grid_spec=pltpu.PrefetchScalarGridSpec(
            num_scalar_prefetch=0,
            grid=grid,
            in_specs=[
                pl.BlockSpec((2, 8, t_lanes), lambda i: (0, i, 0)),     # x slab
                pl.BlockSpec(memory_space=pltpu.MemorySpace.SMEM),      # params
                pl.BlockSpec(memory_space=pltpu.MemorySpace.SMEM),      # b2
            ],
            out_specs=pl.BlockSpec((8, t_lanes), lambda i: (i, 0)),
        ),
        compiler_params=pltpu.CompilerParams(
            dimension_semantics=("parallel",)),
        cost_estimate=pl.CostEstimate(
            flops=(6 * h + 10) * n_pad,
            transcendentals=(h + 3) * n_pad,
            bytes_accessed=12 * n_pad),
    )(x_slab, params, b2s)

    # Back to the PyTorch (N, 1) convention; trim padding.
    return out.reshape(-1)[:n].reshape(n, 1)


def polarnet_reference(x, w1, b1, w2, b2):
    xc, yc = x[:, 0], x[:, 1]
    r = jnp.sqrt(xc ** 2 + yc ** 2).reshape(-1, 1)
    a = jnp.arctan2(yc, xc).reshape(-1, 1)
    pol = jnp.concatenate([r, a], axis=1)
    hid = jnp.tanh(pol @ w1.T + b1)
    return jax.nn.sigmoid(hid @ w2.T + b2)


if __name__ == "__main__":
    num_hid = 32
    batch = 16

    key = jax.random.PRNGKey(0)
    kx, k1, k2, k3, k4 = jax.random.split(key, 5)

    # Deterministic PyTorch-style init: uniform(-1/sqrt(fan_in), 1/sqrt(fan_in)).
    x = jax.random.normal(kx, (batch, 2), dtype=jnp.float32)
    lim1 = 1.0 / np.sqrt(2.0)
    w1 = jax.random.uniform(k1, (num_hid, 2), jnp.float32, -lim1, lim1)
    b1 = jax.random.uniform(k2, (num_hid,), jnp.float32, -lim1, lim1)
    lim2 = 1.0 / np.sqrt(num_hid)
    w2 = jax.random.uniform(k3, (1, num_hid), jnp.float32, -lim2, lim2)
    b2 = jax.random.uniform(k4, (1,), jnp.float32, -lim2, lim2)

    # bf16 tanh only where the EUP supports it (v6e/v7x); keep f32 on v5e/older.
    kind = jax.devices()[0].device_kind.lower()
    use_bf16 = not any(v in kind for v in ("v2", "v3", "v4", "v5"))

    out = polarnet_forward(x, w1, b1, w2, b2, block_n=8192, use_bf16=use_bf16)
    out = jax.block_until_ready(out)

    ref = polarnet_reference(x, w1, b1, w2, b2)
    tol = 2e-2 if use_bf16 else 1e-3   # bf16 tanh path needs a looser tolerance
    np.testing.assert_allclose(np.asarray(out), np.asarray(ref),
                               rtol=tol, atol=tol)
    assert out.shape == (batch, 1)
    print("KERNEL_OK")
</pallas_src>

<mosaic_0001>
module attributes {stable_mosaic.version = 11 : i64} {
  func.func @polarnet_kernel(%arg0: i32, %arg1: memref<2x8x128xf32, #tpu.memory_space<vmem>>, %arg2: memref<4x32xf32, #tpu.memory_space<smem>>, %arg3: memref<1x1xf32, #tpu.memory_space<smem>>, %arg4: memref<8x128xf32, #tpu.memory_space<vmem>>) attributes {dimension_semantics = [#tpu.dimension_semantics<parallel>], iteration_bounds = array<i64: 1>, scalar_prefetch = 0 : i64, scratch_operands = 0 : i64, tpu.core_type = #tpu.core_type<tc>, window_params = [{transform_indices = @transform_0, window_bounds = array<i64: 2, 8, 128>}, {transform_indices = @transform_1, window_bounds = array<i64: 4, 32>}, {transform_indices = @transform_2, window_bounds = array<i64: 1, 1>}, {transform_indices = @transform_3, window_bounds = array<i64: 8, 128>}]} {
    %c0 = arith.constant 0 : index
    %c0_0 = arith.constant 0 : index
    %c0_1 = arith.constant 0 : index
    %0 = vector.load %arg1[%c0, %c0_0, %c0_1] : memref<2x8x128xf32, #tpu.memory_space<vmem>>, vector<1x8x128xf32>
    %1 = vector.shape_cast %0 : vector<1x8x128xf32> to vector<8x128xf32>
    %c1 = arith.constant 1 : index
    %c0_2 = arith.constant 0 : index
    %c0_3 = arith.constant 0 : index
    %2 = vector.load %arg1[%c1, %c0_2, %c0_3] : memref<2x8x128xf32, #tpu.memory_space<vmem>>, vector<1x8x128xf32>
    %3 = vector.shape_cast %2 : vector<1x8x128xf32> to vector<8x128xf32>
    %4 = arith.mulf %1, %1 : vector<8x128xf32>
    %5 = arith.mulf %3, %3 : vector<8x128xf32>
    %6 = arith.addf %4, %5 : vector<8x128xf32>
    %7 = math.sqrt %6 : vector<8x128xf32>
    %8 = math.atan2 %3, %1 : vector<8x128xf32>
    %cst = arith.constant 0.000000e+00 : f32
    %9 = vector.broadcast %cst : f32 to vector<8x128xf32>
    %c0_4 = arith.constant 0 : index
    %c0_5 = arith.constant 0 : index
    %10 = memref.load %arg2[%c0_4, %c0_5] : memref<4x32xf32, #tpu.memory_space<smem>>
    %c1_6 = arith.constant 1 : index
    %c0_7 = arith.constant 0 : index
    %11 = memref.load %arg2[%c1_6, %c0_7] : memref<4x32xf32, #tpu.memory_space<smem>>
    %c2 = arith.constant 2 : index
    %c0_8 = arith.constant 0 : index
    %12 = memref.load %arg2[%c2, %c0_8] : memref<4x32xf32, #tpu.memory_space<smem>>
    %c3 = arith.constant 3 : index
    %c0_9 = arith.constant 0 : index
    %13 = memref.load %arg2[%c3, %c0_9] : memref<4x32xf32, #tpu.memory_space<smem>>
    %14 = vector.broadcast %10 : f32 to vector<8x128xf32>
    %15 = arith.mulf %14, %7 : vector<8x128xf32>
    %16 = vector.broadcast %11 : f32 to vector<8x128xf32>
    %17 = arith.mulf %16, %8 : vector<8x128xf32>
    %18 = arith.addf %15, %17 : vector<8x128xf32>
    %19 = vector.broadcast %12 : f32 to vector<8x128xf32>
    %20 = arith.addf %18, %19 : vector<8x128xf32>
    %21 = arith.truncf %20 : vector<8x128xf32> to vector<8x128xbf16>
    %22 = math.tanh %21 : vector<8x128xbf16>
    %23 = arith.extf %22 : vector<8x128xbf16> to vector<8x128xf32>
    %24 = vector.broadcast %13 : f32 to vector<8x128xf32>
    %25 = arith.mulf %24, %23 : vector<8x128xf32>
    %26 = arith.addf %9, %25 : vector<8x128xf32>
    %c0_10 = arith.constant 0 : index
    %c1_11 = arith.constant 1 : index
    %27 = memref.load %arg2[%c0_10, %c1_11] : memref<4x32xf32, #tpu.memory_space<smem>>
    %c1_12 = arith.constant 1 : index
    %c1_13 = arith.constant 1 : index
    %28 = memref.load %arg2[%c1_12, %c1_13] : memref<4x32xf32, #tpu.memory_space<smem>>
    %c2_14 = arith.constant 2 : index
    %c1_15 = arith.constant 1 : index
    %29 = memref.load %arg2[%c2_14, %c1_15] : memref<4x32xf32, #tpu.memory_space<smem>>
    %c3_16 = arith.constant 3 : index
    %c1_17 = arith.constant 1 : index
    %30 = memref.load %arg2[%c3_16, %c1_17] : memref<4x32xf32, #tpu.memory_space<smem>>
    %31 = vector.broadcast %27 : f32 to vector<8x128xf32>
    %32 = arith.mulf %31, %7 : vector<8x128xf32>
    %33 = vector.broadcast %28 : f32 to vector<8x128xf32>
    %34 = arith.mulf %33, %8 : vector<8x128xf32>
    %35 = arith.addf %32, %34 : vector<8x128xf32>
    %36 = vector.broadcast %29 : f32 to vector<8x128xf32>
    %37 = arith.addf %35, %36 : vector<8x128xf32>
    %38 = arith.truncf %37 : vector<8x128xf32> to vector<8x128xbf16>
    %39 = math.tanh %38 : vector<8x128xbf16>
    %40 = arith.extf %39 : vector<8x128xbf16> to vector<8x128xf32>
    %41 = vector.broadcast %30 : f32 to vector<8x128xf32>
    %42 = arith.mulf %41, %40 : vector<8x128xf32>
    %43 = arith.addf %26, %42 : vector<8x128xf32>
    %c0_18 = arith.constant 0 : index
    %c2_19 = arith.constant 2 : index
    %44 = memref.load %arg2[%c0_18, %c2_19] : memref<4x32xf32, #tpu.memory_space<smem>>
    %c1_20 = arith.constant 1 : index
    %c2_21 = arith.constant 2 : index
    %45 = memref.load %arg2[%c1_20, %c2_21] : memref<4x32xf32, #tpu.memory_space<smem>>
    %c2_22 = arith.constant 2 : index
    %c2_23 = arith.constant 2 : index
    %46 = memref.load %arg2[%c2_22, %c2_23] : memref<4x32xf32, #tpu.memory_space<smem>>
    %c3_24 = arith.constant 3 : index
    %c2_25 = arith.constant 2 : index
    %47 = memref.load %arg2[%c3_24, %c2_25] : memref<4x32xf32, #tpu.memory_space<smem>>
    %48 = vector.broadcast %44 : f32 to vector<8x128xf32>
    %49 = arith.mulf %48, %7 : vector<8x128xf32>
    %50 = vector.broadcast %45 : f32 to vector<8x128xf32>
    %51 = arith.mulf %50, %8 : vector<8x128xf32>
    %52 = arith.addf %49, %51 : vector<8x128xf32>
    %53 = vector.broadcast %46 : f32 to vector<8x128xf32>
    %54 = arith.addf %52, %53 : vector<8x128xf32>
    %55 = arith.truncf %54 : vector<8x128xf32> to vector<8x128xbf16>
    %56 = math.tanh %55 : vector<8x128xbf16>
    %57 = arith.extf %56 : vector<8x128xbf16> to vector<8x128xf32>
    %58 = vector.broadcast %47 : f32 to vector<8x128xf32>
    %59 = arith.mulf %58, %57 : vector<8x128xf32>
    %60 = arith.addf %43, %59 : vector<8x128xf32>
    %c0_26 = arith.constant 0 : index
    %c3_27 = arith.constant 3 : index
    %61 = memref.load %arg2[%c0_26, %c3_27] : memref<4x32xf32, #tpu.memory_space<smem>>
    %c1_28 = arith.constant 1 : index
    %c3_29 = arith.constant 3 : index
    %62 = memref.load %arg2[%c1_28, %c3_29] : memref<4x32xf32, #tpu.memory_space<smem>>
    %c2_30 = arith.constant 2 : index
    %c3_31 = arith.constant 3 : index
    %63 = memref.load %arg2[%c2_30, %c3_31] : memref<4x32xf32, #tpu.memory_space<smem>>
    %c3_32 = arith.constant 3 : index
    %c3_33 = arith.constant 3 : index
    %64 = memref.load %arg2[%c3_32, %c3_33] : memref<4x32xf32, #tpu.memory_space<smem>>
    %65 = vector.broadcast %61 : f32 to vector<8x128xf32>
    %66 = arith.mulf %65, %7 : vector<8x128xf32>
    %67 = vector.broadcast %62 : f32 to vector<8x128xf32>
    %68 = arith.mulf %67, %8 : vector<8x128xf32>
    %69 = arith.addf %66, %68 : vector<8x128xf32>
    %70 = vector.broadcast %63 : f32 to vector<8x128xf32>
    %71 = arith.addf %69, %70 : vector<8x128xf32>
    %72 = arith.truncf %71 : vector<8x128xf32> to vector<8x128xbf16>
    %73 = math.tanh %72 : vector<8x128xbf16>
    %74 = arith.extf %73 : vector<8x128xbf16> to vector<8x128xf32>
    %75 = vector.broadcast %64 : f32 to vector<8x128xf32>
    %76 = arith.mulf %75, %74 : vector<8x128xf32>
    %77 = arith.addf %60, %76 : vector<8x128xf32>
    %c0_34 = arith.constant 0 : index
    %c4 = arith.constant 4 : index
    %78 = memref.load %arg2[%c0_34, %c4] : memref<4x32xf32, #tpu.memory_space<smem>>
    %c1_35 = arith.constant 1 : index
    %c4_36 = arith.constant 4 : index
    %79 = memref.load %arg2[%c1_35, %c4_36] : memref<4x32xf32, #tpu.memory_space<smem>>
    %c2_37 = arith.constant 2 : index
    %c4_38 = arith.constant 4 : index
    %80 = memref.load %arg2[%c2_37, %c4_38] : memref<4x32xf32, #tpu.memory_space<smem>>
    %c3_39 = arith.constant 3 : index
    %c4_40 = arith.constant 4 : index
    %81 = memref.load %arg2[%c3_39, %c4_40] : memref<4x32xf32, #tpu.memory_space<smem>>
    %82 = vector.broadcast %78 : f32 to vector<8x128xf32>
    %83 = arith.mulf %82, %7 : vector<8x128xf32>
    %84 = vector.broadcast %79 : f32 to vector<8x128xf32>
    %85 = arith.mulf %84, %8 : vector<8x128xf32>
    %86 = arith.addf %83, %85 : vector<8x128xf32>
    %87 = vector.broadcast %80 : f32 to vector<8x128xf32>
    %88 = arith.addf %86, %87 : vector<8x128xf32>
    %89 = arith.truncf %88 : vector<8x128xf32> to vector<8x128xbf16>
    %90 = math.tanh %89 : vector<8x128xbf16>
    %91 = arith.extf %90 : vector<8x128xbf16> to vector<8x128xf32>
    %92 = vector.broadcast %81 : f32 to vector<8x128xf32>
    %93 = arith.mulf %92, %91 : vector<8x128xf32>
    %94 = arith.addf %77, %93 : vector<8x128xf32>
    %c0_41 = arith.constant 0 : index
    %c5 = arith.constant 5 : index
    %95 = memref.load %arg2[%c0_41, %c5] : memref<4x32xf32, #tpu.memory_space<smem>>
    %c1_42 = arith.constant 1 : index
    %c5_43 = arith.constant 5 : index
    %96 = memref.load %arg2[%c1_42, %c5_43] : memref<4x32xf32, #tpu.memory_space<smem>>
    %c2_44 = arith.constant 2 : index
    %c5_45 = arith.constant 5 : index
    %97 = memref.load %arg2[%c2_44, %c5_45] : memref<4x32xf32, #tpu.memory_space<smem>>
    %c3_46 = arith.constant 3 : index
    %c5_47 = arith.constant 5 : index
    %98 = memref.load %arg2[%c3_46, %c5_47] : memref<4x32xf32, #tpu.memory_space<smem>>
    %99 = vector.broadcast %95 : f32 to vector<8x128xf32>
    %100 = arith.mulf %99, %7 : vector<8x128xf32>
    %101 = vector.broadcast %96 : f32 to vector<8x128xf32>
    %102 = arith.mulf %101, %8 : vector<8x128xf32>
    %103 = arith.addf %100, %102 : vector<8x128xf32>
    %104 = vector.broadcast %97 : f32 to vector<8x128xf32>
    %105 = arith.addf %103, %104 : vector<8x128xf32>
    %106 = arith.truncf %105 : vector<8x128xf32> to vector<8x128xbf16>
    %107 = math.tanh %106 : vector<8x128xbf16>
    %108 = arith.extf %107 : vector<8x128xbf16> to vector<8x128xf32>
    %109 = vector.broadcast %98 : f32 to vector<8x128xf32>
    %110 = arith.mulf %109, %108 : vector<8x128xf32>
    %111 = arith.addf %94, %110 : vector<8x128xf32>
    %c0_48 = arith.constant 0 : index
    %c6 = arith.constant 6 : index
    %112 = memref.load %arg2[%c0_48, %c6] : memref<4x32xf32, #tpu.memory_space<smem>>
    %c1_49 = arith.constant 1 : index
    %c6_50 = arith.constant 6 : index
    %113 = memref.load %arg2[%c1_49, %c6_50] : memref<4x32xf32, #tpu.memory_space<smem>>
    %c2_51 = arith.constant 2 : index
    %c6_52 = arith.constant 6 : index
    %114 = memref.load %arg2[%c2_51, %c6_52] : memref<4x32xf32, #tpu.memory_space<smem>>
    %c3_53 = arith.constant 3 : index
    %c6_54 = arith.constant 6 : index
    %115 = memref.load %arg2[%c3_53, %c6_54] : memref<4x32xf32, #tpu.memory_space<smem>>
    %116 = vector.broadcast %112 : f32 to vector<8x128xf32>
    %117 = arith.mulf %116, %7 : vector<8x128xf32>
    %118 = vector.broadcast %113 : f32 to vector<8x128xf32>
    %119 = arith.mulf %118, %8 : vector<8x128xf32>
    %120 = arith.addf %117, %119 : vector<8x128xf32>
    %121 = vector.broadcast %114 : f32 to vector<8x128xf32>
    %122 = arith.addf %120, %121 : vector<8x128xf32>
    %123 = arith.truncf %122 : vector<8x128xf32> to vector<8x128xbf16>
    %124 = math.tanh %123 : vector<8x128xbf16>
    %125 = arith.extf %124 : vector<8x128xbf16> to vector<8x128xf32>
    %126 = vector.broadcast %115 : f32 to vector<8x128xf32>
    %127 = arith.mulf %126, %125 : vector<8x128xf32>
    %128 = arith.addf %111, %127 : vector<8x128xf32>
    %c0_55 = arith.constant 0 : index
    %c7 = arith.constant 7 : index
    %129 = memref.load %arg2[%c0_55, %c7] : memref<4x32xf32, #tpu.memory_space<smem>>
    %c1_56 = arith.constant 1 : index
    %c7_57 = arith.constant 7 : index
    %130 = memref.load %arg2[%c1_56, %c7_57] : memref<4x32xf32, #tpu.memory_space<smem>>
    %c2_58 = arith.constant 2 : index
    %c7_59 = arith.constant 7 : index
    %131 = memref.load %arg2[%c2_58, %c7_59] : memref<4x32xf32, #tpu.memory_space<smem>>
    %c3_60 = arith.constant 3 : index
    %c7_61 = arith.constant 7 : index
    %132 = memref.load %arg2[%c3_60, %c7_61] : memref<4x32xf32, #tpu.memory_space<smem>>
    %133 = vector.broadcast %129 : f32 to vector<8x128xf32>
    %134 = arith.mulf %133, %7 : vector<8x128xf32>
    %135 = vector.broadcast %130 : f32 to vector<8x128xf32>
    %136 = arith.mulf %135, %8 : vector<8x128xf32>
    %137 = arith.addf %134, %136 : vector<8x128xf32>
    %138 = vector.broadcast %131 : f32 to vector<8x128xf32>
    %139 = arith.addf %137, %138 : vector<8x128xf32>
    %140 = arith.truncf %139 : vector<8x128xf32> to vector<8x128xbf16>
    %141 = math.tanh %140 : vector<8x128xbf16>
    %142 = arith.extf %141 : vector<8x128xbf16> to vector<8x128xf32>
    %143 = vector.broadcast %132 : f32 to vector<8x128xf32>
    %144 = arith.mulf %143, %142 : vector<8x128xf32>
    %145 = arith.addf %128, %144 : vector<8x128xf32>
    %c0_62 = arith.constant 0 : index
    %c8 = arith.constant 8 : index
    %146 = memref.load %arg2[%c0_62, %c8] : memref<4x32xf32, #tpu.memory_space<smem>>
    %c1_63 = arith.constant 1 : index
    %c8_64 = arith.constant 8 : index
    %147 = memref.load %arg2[%c1_63, %c8_64] : memref<4x32xf32, #tpu.memory_space<smem>>
    %c2_65 = arith.constant 2 : index
    %c8_66 = arith.constant 8 : index
    %148 = memref.load %arg2[%c2_65, %c8_66] : memref<4x32xf32, #tpu.memory_space<smem>>
    %c3_67 = arith.constant 3 : index
    %c8_68 = arith.constant 8 : index
    %149 = memref.load %arg2[%c3_67, %c8_68] : memref<4x32xf32, #tpu.memory_space<smem>>
    %150 = vector.broadcast %146 : f32 to vector<8x128xf32>
    %151 = arith.mulf %150, %7 : vector<8x128xf32>
    %152 = vector.broadcast %147 : f32 to vector<8x128xf32>
    %153 = arith.mulf %152, %8 : vector<8x128xf32>
    %154 = arith.addf %151, %153 : vector<8x128xf32>
    %155 = vector.broadcast %148 : f32 to vector<8x128xf32>
    %156 = arith.addf %154, %155 : vector<8x128xf32>
    %157 = arith.truncf %156 : vector<8x128xf32> to vector<8x128xbf16>
    %158 = math.tanh %157 : vector<8x128xbf16>
    %159 = arith.extf %158 : vector<8x128xbf16> to vector<8x128xf32>
    %160 = vector.broadcast %149 : f32 to vector<8x128xf32>
    %161 = arith.mulf %160, %159 : vector<8x128xf32>
    %162 = arith.addf %145, %161 : vector<8x128xf32>
    %c0_69 = arith.constant 0 : index
    %c9 = arith.constant 9 : index
    %163 = memref.load %arg2[%c0_69, %c9] : memref<4x32xf32, #tpu.memory_space<smem>>
    %c1_70 = arith.constant 1 : index
    %c9_71 = arith.constant 9 : index
    %164 = memref.load %arg2[%c1_70, %c9_71] : memref<4x32xf32, #tpu.memory_space<smem>>
    %c2_72 = arith.constant 2 : index
    %c9_73 = arith.constant 9 : index
    %165 = memref.load %arg2[%c2_72, %c9_73] : memref<4x32xf32, #tpu.memory_space<smem>>
    %c3_74 = arith.constant 3 : index
    %c9_75 = arith.constant 9 : index
    %166 = memref.load %arg2[%c3_74, %c9_75] : memref<4x32xf32, #tpu.memory_space<smem>>
    %167 = vector.broadcast %163 : f32 to vector<8x128xf32>
    %168 = arith.mulf %167, %7 : vector<8x128xf32>
    %169 = vector.broadcast %164 : f32 to vector<8x128xf32>
    %170 = arith.mulf %169, %8 : vector<8x128xf32>
    %171 = arith.addf %168, %170 : vector<8x128xf32>
    %172 = vector.broadcast %165 : f32 to vector<8x128xf32>
    %173 = arith.addf %171, %172 : vector<8x128xf32>
    %174 = arith.truncf %173 : vector<8x128xf32> to vector<8x128xbf16>
    %175 = math.tanh %174 : vector<8x128xbf16>
    %176 = arith.extf %175 : vector<8x128xbf16> to vector<8x128xf32>
    %177 = vector.broadcast %166 : f32 to vector<8x128xf32>
    %178 = arith.mulf %177, %176 : vector<8x128xf32>
    %179 = arith.addf %162, %178 : vector<8x128xf32>
    %c0_76 = arith.constant 0 : index
    %c10 = arith.constant 10 : index
    %180 = memref.load %arg2[%c0_76, %c10] : memref<4x32xf32, #tpu.memory_space<smem>>
    %c1_77 = arith.constant 1 : index
    %c10_78 = arith.constant 10 : index
    %181 = memref.load %arg2[%c1_77, %c10_78] : memref<4x32xf32, #tpu.memory_space<smem>>
    %c2_79 = arith.constant 2 : index
    %c10_80 = arith.constant 10 : index
    %182 = memref.load %arg2[%c2_79, %c10_80] : memref<4x32xf32, #tpu.memory_space<smem>>
    %c3_81 = arith.constant 3 : index
    %c10_82 = arith.constant 10 : index
    %183 = memref.load %arg2[%c3_81, %c10_82] : memref<4x32xf32, #tpu.memory_space<smem>>
    %184 = vector.broadcast %180 : f32 to vector<8x128xf32>
    %185 = arith.mulf %184, %7 : vector<8x128xf32>
    %186 = vector.broadcast %181 : f32 to vector<8x128xf32>
    %187 = arith.mulf %186, %8 : vector<8x128xf32>
    %188 = arith.addf %185, %187 : vector<8x128xf32>
    %189 = vector.broadcast %182 : f32 to vector<8x128xf32>
    %190 = arith.addf %188, %189 : vector<8x128xf32>
    %191 = arith.truncf %190 : vector<8x128xf32> to vector<8x128xbf16>
    %192 = math.tanh %191 : vector<8x128xbf16>
    %193 = arith.extf %192 : vector<8x128xbf16> to vector<8x128xf32>
    %194 = vector.broadcast %183 : f32 to vector<8x128xf32>
    %195 = arith.mulf %194, %193 : vector<8x128xf32>
    %196 = arith.addf %179, %195 : vector<8x128xf32>
    %c0_83 = arith.constant 0 : index
    %c11 = arith.constant 11 : index
    %197 = memref.load %arg2[%c0_83, %c11] : memref<4x32xf32, #tpu.memory_space<smem>>
    %c1_84 = arith.constant 1 : index
    %c11_85 = arith.constant 11 : index
    %198 = memref.load %arg2[%c1_84, %c11_85] : memref<4x32xf32, #tpu.memory_space<smem>>
    %c2_86 = arith.constant 2 : index
    %c11_87 = arith.constant 11 : index
    %199 = memref.load %arg2[%c2_86, %c11_87] : memref<4x32xf32, #tpu.memory_space<smem>>
    %c3_88 = arith.constant 3 : index
    %c11_89 = arith.constant 11 : index
    %200 = memref.load %arg2[%c3_88, %c11_89] : memref<4x32xf32, #tpu.memory_space<smem>>
    %201 = vector.broadcast %197 : f32 to vector<8x128xf32>
    %202 = arith.mulf %201, %7 : vector<8x128xf32>
    %203 = vector.broadcast %198 : f32 to vector<8x128xf32>
    %204 = arith.mulf %203, %8 : vector<8x128xf32>
    %205 = arith.addf %202, %204 : vector<8x128xf32>
    %206 = vector.broadcast %199 : f32 to vector<8x128xf32>
    %207 = arith.addf %205, %206 : vector<8x128xf32>
    %208 = arith.truncf %207 : vector<8x128xf32> to vector<8x128xbf16>
    %209 = math.tanh %208 : vector<8x128xbf16>
    %210 = arith.extf %209 : vector<8x128xbf16> to vector<8x128xf32>
    %211 = vector.broadcast %200 : f32 to vector<8x128xf32>
    %212 = arith.mulf %211, %210 : vector<8x128xf32>
    %213 = arith.addf %196, %212 : vector<8x128xf32>
    %c0_90 = arith.constant 0 : index
    %c12 = arith.constant 12 : index
    %214 = memref.load %arg2[%c0_90, %c12] : memref<4x32xf32, #tpu.memory_space<smem>>
    %c1_91 = arith.constant 1 : index
    %c12_92 = arith.constant 12 : index
    %215 = memref.load %arg2[%c1_91, %c12_92] : memref<4x32xf32, #tpu.memory_space<smem>>
    %c2_93 = arith.constant 2 : index
    %c12_94 = arith.constant 12 : index
    %216 = memref.load %arg2[%c2_93, %c12_94] : memref<4x32xf32, #tpu.memory_space<smem>>
    %c3_95 = arith.constant 3 : index
    %c12_96 = arith.constant 12 : index
    %217 = memref.load %arg2[%c3_95, %c12_96] : memref<4x32xf32, #tpu.memory_space<smem>>
    %218 = vector.broadcast %214 : f32 to vector<8x128xf32>
    %219 = arith.mulf %218, %7 : vector<8x128xf32>
    %220 = vector.broadcast %215 : f32 to vector<8x128xf32>
    %221 = arith.mulf %220, %8 : vector<8x128xf32>
    %222 = arith.addf %219, %221 : vector<8x128xf32>
    %223 = vector.broadcast %216 : f32 to vector<8x128xf32>
    %224 = arith.addf %222, %223 : vector<8x128xf32>
    %225 = arith.truncf %224 : vector<8x128xf32> to vector<8x128xbf16>
    %226 = math.tanh %225 : vector<8x128xbf16>
    %227 = arith.extf %226 : vector<8x128xbf16> to vector<8x128xf32>
    %228 = vector.broadcast %217 : f32 to vector<8x128xf32>
    %229 = arith.mulf %228, %227 : vector<8x128xf32>
    %230 = arith.addf %213, %229 : vector<8x128xf32>
    %c0_97 = arith.constant 0 : index
    %c13 = arith.constant 13 : index
    %231 = memref.load %arg2[%c0_97, %c13] : memref<4x32xf32, #tpu.memory_space<smem>>
    %c1_98 = arith.constant 1 : index
    %c13_99 = arith.constant 13 : index
    %232 = memref.load %arg2[%c1_98, %c13_99] : memref<4x32xf32, #tpu.memory_space<smem>>
    %c2_100 = arith.constant 2 : index
    %c13_101 = arith.constant 13 : index
    %233 = memref.load %arg2[%c2_100, %c13_101] : memref<4x32xf32, #tpu.memory_space<smem>>
    %c3_102 = arith.constant 3 : index
    %c13_103 = arith.constant 13 : index
    %234 = memref.load %arg2[%c3_102, %c13_103] : memref<4x32xf32, #tpu.memory_space<smem>>
    %235 = vector.broadcast %231 : f32 to vector<8x128xf32>
    %236 = arith.mulf %235, %7 : vector<8x128xf32>
    %237 = vector.broadcast %232 : f32 to vector<8x128xf32>
    %238 = arith.mulf %237, %8 : vector<8x128xf32>
    %239 = arith.addf %236, %238 : vector<8x128xf32>
    %240 = vector.broadcast %233 : f32 to vector<8x128xf32>
    %241 = arith.addf %239, %240 : vector<8x128xf32>
    %242 = arith.truncf %241 : vector<8x128xf32> to vector<8x128xbf16>
    %243 = math.tanh %242 : vector<8x128xbf16>
    %244 = arith.extf %243 : vector<8x128xbf16> to vector<8x128xf32>
    %245 = vector.broadcast %234 : f32 to vector<8x128xf32>
    %246 = arith.mulf %245, %244 : vector<8x128xf32>
    %247 = arith.addf %230, %246 : vector<8x128xf32>
    %c0_104 = arith.constant 0 : index
    %c14 = arith.constant 14 : index
    %248 = memref.load %arg2[%c0_104, %c14] : memref<4x32xf32, #tpu.memory_space<smem>>
    %c1_105 = arith.constant 1 : index
    %c14_106 = arith.constant 14 : index
    %249 = memref.load %arg2[%c1_105, %c14_106] : memref<4x32xf32, #tpu.memory_space<smem>>
    %c2_107 = arith.constant 2 : index
    %c14_108 = arith.constant 14 : index
    %250 = memref.load %arg2[%c2_107, %c14_108] : memref<4x32xf32, #tpu.memory_space<smem>>
    %c3_109 = arith.constant 3 : index
    %c14_110 = arith.constant 14 : index
    %251 = memref.load %arg2[%c3_109, %c14_110] : memref<4x32xf32, #tpu.memory_space<smem>>
    %252 = vector.broadcast %248 : f32 to vector<8x128xf32>
    %253 = arith.mulf %252, %7 : vector<8x128xf32>
    %254 = vector.broadcast %249 : f32 to vector<8x128xf32>
    %255 = arith.mulf %254, %8 : vector<8x128xf32>
    %256 = arith.addf %253, %255 : vector<8x128xf32>
    %257 = vector.broadcast %250 : f32 to vector<8x128xf32>
    %258 = arith.addf %256, %257 : vector<8x128xf32>
    %259 = arith.truncf %258 : vector<8x128xf32> to vector<8x128xbf16>
    %260 = math.tanh %259 : vector<8x128xbf16>
    %261 = arith.extf %260 : vector<8x128xbf16> to vector<8x128xf32>
    %262 = vector.broadcast %251 : f32 to vector<8x128xf32>
    %263 = arith.mulf %262, %261 : vector<8x128xf32>
    %264 = arith.addf %247, %263 : vector<8x128xf32>
    %c0_111 = arith.constant 0 : index
    %c15 = arith.constant 15 : index
    %265 = memref.load %arg2[%c0_111, %c15] : memref<4x32xf32, #tpu.memory_space<smem>>
    %c1_112 = arith.constant 1 : index
    %c15_113 = arith.constant 15 : index
    %266 = memref.load %arg2[%c1_112, %c15_113] : memref<4x32xf32, #tpu.memory_space<smem>>
    %c2_114 = arith.constant 2 : index
    %c15_115 = arith.constant 15 : index
    %267 = memref.load %arg2[%c2_114, %c15_115] : memref<4x32xf32, #tpu.memory_space<smem>>
    %c3_116 = arith.constant 3 : index
    %c15_117 = arith.constant 15 : index
    %268 = memref.load %arg2[%c3_116, %c15_117] : memref<4x32xf32, #tpu.memory_space<smem>>
    %269 = vector.broadcast %265 : f32 to vector<8x128xf32>
    %270 = arith.mulf %269, %7 : vector<8x128xf32>
    %271 = vector.broadcast %266 : f32 to vector<8x128xf32>
    %272 = arith.mulf %271, %8 : vector<8x128xf32>
    %273 = arith.addf %270, %272 : vector<8x128xf32>
    %274 = vector.broadcast %267 : f32 to vector<8x128xf32>
    %275 = arith.addf %273, %274 : vector<8x128xf32>
    %276 = arith.truncf %275 : vector<8x128xf32> to vector<8x128xbf16>
    %277 = math.tanh %276 : vector<8x128xbf16>
    %278 = arith.extf %277 : vector<8x128xbf16> to vector<8x128xf32>
    %279 = vector.broadcast %268 : f32 to vector<8x128xf32>
    %280 = arith.mulf %279, %278 : vector<8x128xf32>
    %281 = arith.addf %264, %280 : vector<8x128xf32>
    %c0_118 = arith.constant 0 : index
    %c16 = arith.constant 16 : index
    %282 = memref.load %arg2[%c0_118, %c16] : memref<4x32xf32, #tpu.memory_space<smem>>
    %c1_119 = arith.constant 1 : index
    %c16_120 = arith.constant 16 : index
    %283 = memref.load %arg2[%c1_119, %c16_120] : memref<4x32xf32, #tpu.memory_space<smem>>
    %c2_121 = arith.constant 2 : index
    %c16_122 = arith.constant 16 : index
    %284 = memref.load %arg2[%c2_121, %c16_122] : memref<4x32xf32, #tpu.memory_space<smem>>
    %c3_123 = arith.constant 3 : index
    %c16_124 = arith.constant 16 : index
    %285 = memref.load %arg2[%c3_123, %c16_124] : memref<4x32xf32, #tpu.memory_space<smem>>
    %286 = vector.broadcast %282 : f32 to vector<8x128xf32>
    %287 = arith.mulf %286, %7 : vector<8x128xf32>
    %288 = vector.broadcast %283 : f32 to vector<8x128xf32>
    %289 = arith.mulf %288, %8 : vector<8x128xf32>
    %290 = arith.addf %287, %289 : vector<8x128xf32>
    %291 = vector.broadcast %284 : f32 to vector<8x128xf32>
    %292 = arith.addf %290, %291 : vector<8x128xf32>
    %293 = arith.truncf %292 : vector<8x128xf32> to vector<8x128xbf16>
    %294 = math.tanh %293 : vector<8x128xbf16>
    %295 = arith.extf %294 : vector<8x128xbf16> to vector<8x128xf32>
    %296 = vector.broadcast %285 : f32 to vector<8x128xf32>
    %297 = arith.mulf %296, %295 : vector<8x128xf32>
    %298 = arith.addf %281, %297 : vector<8x128xf32>
    %c0_125 = arith.constant 0 : index
    %c17 = arith.constant 17 : index
    %299 = memref.load %arg2[%c0_125, %c17] : memref<4x32xf32, #tpu.memory_space<smem>>
    %c1_126 = arith.constant 1 : index
    %c17_127 = arith.constant 17 : index
    %300 = memref.load %arg2[%c1_126, %c17_127] : memref<4x32xf32, #tpu.memory_space<smem>>
    %c2_128 = arith.constant 2 : index
    %c17_129 = arith.constant 17 : index
    %301 = memref.load %arg2[%c2_128, %c17_129] : memref<4x32xf32, #tpu.memory_space<smem>>
    %c3_130 = arith.constant 3 : index
    %c17_131 = arith.constant 17 : index
    %302 = memref.load %arg2[%c3_130, %c17_131] : memref<4x32xf32, #tpu.memory_space<smem>>
    %303 = vector.broadcast %299 : f32 to vector<8x128xf32>
    %304 = arith.mulf %303, %7 : vector<8x128xf32>
    %305 = vector.broadcast %300 : f32 to vector<8x128xf32>
    %306 = arith.mulf %305, %8 : vector<8x128xf32>
    %307 = arith.addf %304, %306 : vector<8x128xf32>
    %308 = vector.broadcast %301 : f32 to vector<8x128xf32>
    %309 = arith.addf %307, %308 : vector<8x128xf32>
    %310 = arith.truncf %309 : vector<8x128xf32> to vector<8x128xbf16>
    %311 = math.tanh %310 : vector<8x128xbf16>
    %312 = arith.extf %311 : vector<8x128xbf16> to vector<8x128xf32>
    %313 = vector.broadcast %302 : f32 to vector<8x128xf32>
    %314 = arith.mulf %313, %312 : vector<8x128xf32>
    %315 = arith.addf %298, %314 : vector<8x128xf32>
    %c0_132 = arith.constant 0 : index
    %c18 = arith.constant 18 : index
    %316 = memref.load %arg2[%c0_132, %c18] : memref<4x32xf32, #tpu.memory_space<smem>>
    %c1_133 = arith.constant 1 : index
    %c18_134 = arith.constant 18 : index
    %317 = memref.load %arg2[%c1_133, %c18_134] : memref<4x32xf32, #tpu.memory_space<smem>>
    %c2_135 = arith.constant 2 : index
    %c18_136 = arith.constant 18 : index
    %318 = memref.load %arg2[%c2_135, %c18_136] : memref<4x32xf32, #tpu.memory_space<smem>>
    %c3_137 = arith.constant 3 : index
    %c18_138 = arith.constant 18 : index
    %319 = memref.load %arg2[%c3_137, %c18_138] : memref<4x32xf32, #tpu.memory_space<smem>>
    %320 = vector.broadcast %316 : f32 to vector<8x128xf32>
    %321 = arith.mulf %320, %7 : vector<8x128xf32>
    %322 = vector.broadcast %317 : f32 to vector<8x128xf32>
    %323 = arith.mulf %322, %8 : vector<8x128xf32>
    %324 = arith.addf %321, %323 : vector<8x128xf32>
    %325 = vector.broadcast %318 : f32 to vector<8x128xf32>
    %326 = arith.addf %324, %325 : vector<8x128xf32>
    %327 = arith.truncf %326 : vector<8x128xf32> to vector<8x128xbf16>
    %328 = math.tanh %327 : vector<8x128xbf16>
    %329 = arith.extf %328 : vector<8x128xbf16> to vector<8x128xf32>
    %330 = vector.broadcast %319 : f32 to vector<8x128xf32>
    %331 = arith.mulf %330, %329 : vector<8x128xf32>
    %332 = arith.addf %315, %331 : vector<8x128xf32>
    %c0_139 = arith.constant 0 : index
    %c19 = arith.constant 19 : index
    %333 = memref.load %arg2[%c0_139, %c19] : memref<4x32xf32, #tpu.memory_space<smem>>
    %c1_140 = arith.constant 1 : index
    %c19_141 = arith.constant 19 : index
    %334 = memref.load %arg2[%c1_140, %c19_141] : memref<4x32xf32, #tpu.memory_space<smem>>
    %c2_142 = arith.constant 2 : index
    %c19_143 = arith.constant 19 : index
    %335 = memref.load %arg2[%c2_142, %c19_143] : memref<4x32xf32, #tpu.memory_space<smem>>
    %c3_144 = arith.constant 3 : index
    %c19_145 = arith.constant 19 : index
    %336 = memref.load %arg2[%c3_144, %c19_145] : memref<4x32xf32, #tpu.memory_space<smem>>
    %337 = vector.broadcast %333 : f32 to vector<8x128xf32>
    %338 = arith.mulf %337, %7 : vector<8x128xf32>
    %339 = vector.broadcast %334 : f32 to vector<8x128xf32>
    %340 = arith.mulf %339, %8 : vector<8x128xf32>
    %341 = arith.addf %338, %340 : vector<8x128xf32>
    %342 = vector.broadcast %335 : f32 to vector<8x128xf32>
    %343 = arith.addf %341, %342 : vector<8x128xf32>
    %344 = arith.truncf %343 : vector<8x128xf32> to vector<8x128xbf16>
    %345 = math.tanh %344 : vector<8x128xbf16>
    %346 = arith.extf %345 : vector<8x128xbf16> to vector<8x128xf32>
    %347 = vector.broadcast %336 : f32 to vector<8x128xf32>
    %348 = arith.mulf %347, %346 : vector<8x128xf32>
    %349 = arith.addf %332, %348 : vector<8x128xf32>
    %c0_146 = arith.constant 0 : index
    %c20 = arith.constant 20 : index
    %350 = memref.load %arg2[%c0_146, %c20] : memref<4x32xf32, #tpu.memory_space<smem>>
    %c1_147 = arith.constant 1 : index
    %c20_148 = arith.constant 20 : index
    %351 = memref.load %arg2[%c1_147, %c20_148] : memref<4x32xf32, #tpu.memory_space<smem>>
    %c2_149 = arith.constant 2 : index
    %c20_150 = arith.constant 20 : index
    %352 = memref.load %arg2[%c2_149, %c20_150] : memref<4x32xf32, #tpu.memory_space<smem>>
    %c3_151 = arith.constant 3 : index
    %c20_152 = arith.constant 20 : index
    %353 = memref.load %arg2[%c3_151, %c20_152] : memref<4x32xf32, #tpu.memory_space<smem>>
    %354 = vector.broadcast %350 : f32 to vector<8x128xf32>
    %355 = arith.mulf %354, %7 : vector<8x128xf32>
    %356 = vector.broadcast %351 : f32 to vector<8x128xf32>
    %357 = arith.mulf %356, %8 : vector<8x128xf32>
    %358 = arith.addf %355, %357 : vector<8x128xf32>
    %359 = vector.broadcast %352 : f32 to vector<8x128xf32>
    %360 = arith.addf %358, %359 : vector<8x128xf32>
    %361 = arith.truncf %360 : vector<8x128xf32> to vector<8x128xbf16>
    %362 = math.tanh %361 : vector<8x128xbf16>
    %363 = arith.extf %362 : vector<8x128xbf16> to vector<8x128xf32>
    %364 = vector.broadcast %353 : f32 to vector<8x128xf32>
    %365 = arith.mulf %364, %363 : vector<8x128xf32>
    %366 = arith.addf %349, %365 : vector<8x128xf32>
    %c0_153 = arith.constant 0 : index
    %c21 = arith.constant 21 : index
    %367 = memref.load %arg2[%c0_153, %c21] : memref<4x32xf32, #tpu.memory_space<smem>>
    %c1_154 = arith.constant 1 : index
    %c21_155 = arith.constant 21 : index
    %368 = memref.load %arg2[%c1_154, %c21_155] : memref<4x32xf32, #tpu.memory_space<smem>>
    %c2_156 = arith.constant 2 : index
    %c21_157 = arith.constant 21 : index
    %369 = memref.load %arg2[%c2_156, %c21_157] : memref<4x32xf32, #tpu.memory_space<smem>>
    %c3_158 = arith.constant 3 : index
    %c21_159 = arith.constant 21 : index
    %370 = memref.load %arg2[%c3_158, %c21_159] : memref<4x32xf32, #tpu.memory_space<smem>>
    %371 = vector.broadcast %367 : f32 to vector<8x128xf32>
    %372 = arith.mulf %371, %7 : vector<8x128xf32>
    %373 = vector.broadcast %368 : f32 to vector<8x128xf32>
    %374 = arith.mulf %373, %8 : vector<8x128xf32>
    %375 = arith.addf %372, %374 : vector<8x128xf32>
    %376 = vector.broadcast %369 : f32 to vector<8x128xf32>
    %377 = arith.addf %375, %376 : vector<8x128xf32>
    %378 = arith.truncf %377 : vector<8x128xf32> to vector<8x128xbf16>
    %379 = math.tanh %378 : vector<8x128xbf16>
    %380 = arith.extf %379 : vector<8x128xbf16> to vector<8x128xf32>
    %381 = vector.broadcast %370 : f32 to vector<8x128xf32>
    %382 = arith.mulf %381, %380 : vector<8x128xf32>
    %383 = arith.addf %366, %382 : vector<8x128xf32>
    %c0_160 = arith.constant 0 : index
    %c22 = arith.constant 22 : index
    %384 = memref.load %arg2[%c0_160, %c22] : memref<4x32xf32, #tpu.memory_space<smem>>
    %c1_161 = arith.constant 1 : index
    %c22_162 = arith.constant 22 : index
    %385 = memref.load %arg2[%c1_161, %c22_162] : memref<4x32xf32, #tpu.memory_space<smem>>
    %c2_163 = arith.constant 2 : index
    %c22_164 = arith.constant 22 : index
    %386 = memref.load %arg2[%c2_163, %c22_164] : memref<4x32xf32, #tpu.memory_space<smem>>
    %c3_165 = arith.constant 3 : index
    %c22_166 = arith.constant 22 : index
    %387 = memref.load %arg2[%c3_165, %c22_166] : memref<4x32xf32, #tpu.memory_space<smem>>
    %388 = vector.broadcast %384 : f32 to vector<8x128xf32>
    %389 = arith.mulf %388, %7 : vector<8x128xf32>
    %390 = vector.broadcast %385 : f32 to vector<8x128xf32>
    %391 = arith.mulf %390, %8 : vector<8x128xf32>
    %392 = arith.addf %389, %391 : vector<8x128xf32>
    %393 = vector.broadcast %386 : f32 to vector<8x128xf32>
    %394 = arith.addf %392, %393 : vector<8x128xf32>
    %395 = arith.truncf %394 : vector<8x128xf32> to vector<8x128xbf16>
    %396 = math.tanh %395 : vector<8x128xbf16>
    %397 = arith.extf %396 : vector<8x128xbf16> to vector<8x128xf32>
    %398 = vector.broadcast %387 : f32 to vector<8x128xf32>
    %399 = arith.mulf %398, %397 : vector<8x128xf32>
    %400 = arith.addf %383, %399 : vector<8x128xf32>
    %c0_167 = arith.constant 0 : index
    %c23 = arith.constant 23 : index
    %401 = memref.load %arg2[%c0_167, %c23] : memref<4x32xf32, #tpu.memory_space<smem>>
    %c1_168 = arith.constant 1 : index
    %c23_169 = arith.constant 23 : index
    %402 = memref.load %arg2[%c1_168, %c23_169] : memref<4x32xf32, #tpu.memory_space<smem>>
    %c2_170 = arith.constant 2 : index
    %c23_171 = arith.constant 23 : index
    %403 = memref.load %arg2[%c2_170, %c23_171] : memref<4x32xf32, #tpu.memory_space<smem>>
    %c3_172 = arith.constant 3 : index
    %c23_173 = arith.constant 23 : index
    %404 = memref.load %arg2[%c3_172, %c23_173] : memref<4x32xf32, #tpu.memory_space<smem>>
    %405 = vector.broadcast %401 : f32 to vector<8x128xf32>
    %406 = arith.mulf %405, %7 : vector<8x128xf32>
    %407 = vector.broadcast %402 : f32 to vector<8x128xf32>
    %408 = arith.mulf %407, %8 : vector<8x128xf32>
    %409 = arith.addf %406, %408 : vector<8x128xf32>
    %410 = vector.broadcast %403 : f32 to vector<8x128xf32>
    %411 = arith.addf %409, %410 : vector<8x128xf32>
    %412 = arith.truncf %411 : vector<8x128xf32> to vector<8x128xbf16>
    %413 = math.tanh %412 : vector<8x128xbf16>
    %414 = arith.extf %413 : vector<8x128xbf16> to vector<8x128xf32>
    %415 = vector.broadcast %404 : f32 to vector<8x128xf32>
    %416 = arith.mulf %415, %414 : vector<8x128xf32>
    %417 = arith.addf %400, %416 : vector<8x128xf32>
    %c0_174 = arith.constant 0 : index
    %c24 = arith.constant 24 : index
    %418 = memref.load %arg2[%c0_174, %c24] : memref<4x32xf32, #tpu.memory_space<smem>>
    %c1_175 = arith.constant 1 : index
    %c24_176 = arith.constant 24 : index
    %419 = memref.load %arg2[%c1_175, %c24_176] : memref<4x32xf32, #tpu.memory_space<smem>>
    %c2_177 = arith.constant 2 : index
    %c24_178 = arith.constant 24 : index
    %420 = memref.load %arg2[%c2_177, %c24_178] : memref<4x32xf32, #tpu.memory_space<smem>>
    %c3_179 = arith.constant 3 : index
    %c24_180 = arith.constant 24 : index
    %421 = memref.load %arg2[%c3_179, %c24_180] : memref<4x32xf32, #tpu.memory_space<smem>>
    %422 = vector.broadcast %418 : f32 to vector<8x128xf32>
    %423 = arith.mulf %422, %7 : vector<8x128xf32>
    %424 = vector.broadcast %419 : f32 to vector<8x128xf32>
    %425 = arith.mulf %424, %8 : vector<8x128xf32>
    %426 = arith.addf %423, %425 : vector<8x128xf32>
    %427 = vector.broadcast %420 : f32 to vector<8x128xf32>
    %428 = arith.addf %426, %427 : vector<8x128xf32>
    %429 = arith.truncf %428 : vector<8x128xf32> to vector<8x128xbf16>
    %430 = math.tanh %429 : vector<8x128xbf16>
    %431 = arith.extf %430 : vector<8x128xbf16> to vector<8x128xf32>
    %432 = vector.broadcast %421 : f32 to vector<8x128xf32>
    %433 = arith.mulf %432, %431 : vector<8x128xf32>
    %434 = arith.addf %417, %433 : vector<8x128xf32>
    %c0_181 = arith.constant 0 : index
    %c25 = arith.constant 25 : index
    %435 = memref.load %arg2[%c0_181, %c25] : memref<4x32xf32, #tpu.memory_space<smem>>
    %c1_182 = arith.constant 1 : index
    %c25_183 = arith.constant 25 : index
    %436 = memref.load %arg2[%c1_182, %c25_183] : memref<4x32xf32, #tpu.memory_space<smem>>
    %c2_184 = arith.constant 2 : index
    %c25_185 = arith.constant 25 : index
    %437 = memref.load %arg2[%c2_184, %c25_185] : memref<4x32xf32, #tpu.memory_space<smem>>
    %c3_186 = arith.constant 3 : index
    %c25_187 = arith.constant 25 : index
    %438 = memref.load %arg2[%c3_186, %c25_187] : memref<4x32xf32, #tpu.memory_space<smem>>
    %439 = vector.broadcast %435 : f32 to vector<8x128xf32>
    %440 = arith.mulf %439, %7 : vector<8x128xf32>
    %441 = vector.broadcast %436 : f32 to vector<8x128xf32>
    %442 = arith.mulf %441, %8 : vector<8x128xf32>
    %443 = arith.addf %440, %442 : vector<8x128xf32>
    %444 = vector.broadcast %437 : f32 to vector<8x128xf32>
    %445 = arith.addf %443, %444 : vector<8x128xf32>
    %446 = arith.truncf %445 : vector<8x128xf32> to vector<8x128xbf16>
    %447 = math.tanh %446 : vector<8x128xbf16>
    %448 = arith.extf %447 : vector<8x128xbf16> to vector<8x128xf32>
    %449 = vector.broadcast %438 : f32 to vector<8x128xf32>
    %450 = arith.mulf %449, %448 : vector<8x128xf32>
    %451 = arith.addf %434, %450 : vector<8x128xf32>
    %c0_188 = arith.constant 0 : index
    %c26 = arith.constant 26 : index
    %452 = memref.load %arg2[%c0_188, %c26] : memref<4x32xf32, #tpu.memory_space<smem>>
    %c1_189 = arith.constant 1 : index
    %c26_190 = arith.constant 26 : index
    %453 = memref.load %arg2[%c1_189, %c26_190] : memref<4x32xf32, #tpu.memory_space<smem>>
    %c2_191 = arith.constant 2 : index
    %c26_192 = arith.constant 26 : index
    %454 = memref.load %arg2[%c2_191, %c26_192] : memref<4x32xf32, #tpu.memory_space<smem>>
    %c3_193 = arith.constant 3 : index
    %c26_194 = arith.constant 26 : index
    %455 = memref.load %arg2[%c3_193, %c26_194] : memref<4x32xf32, #tpu.memory_space<smem>>
    %456 = vector.broadcast %452 : f32 to vector<8x128xf32>
    %457 = arith.mulf %456, %7 : vector<8x128xf32>
    %458 = vector.broadcast %453 : f32 to vector<8x128xf32>
    %459 = arith.mulf %458, %8 : vector<8x128xf32>
    %460 = arith.addf %457, %459 : vector<8x128xf32>
    %461 = vector.broadcast %454 : f32 to vector<8x128xf32>
    %462 = arith.addf %460, %461 : vector<8x128xf32>
    %463 = arith.truncf %462 : vector<8x128xf32> to vector<8x128xbf16>
    %464 = math.tanh %463 : vector<8x128xbf16>
    %465 = arith.extf %464 : vector<8x128xbf16> to vector<8x128xf32>
    %466 = vector.broadcast %455 : f32 to vector<8x128xf32>
    %467 = arith.mulf %466, %465 : vector<8x128xf32>
    %468 = arith.addf %451, %467 : vector<8x128xf32>
    %c0_195 = arith.constant 0 : index
    %c27 = arith.constant 27 : index
    %469 = memref.load %arg2[%c0_195, %c27] : memref<4x32xf32, #tpu.memory_space<smem>>
    %c1_196 = arith.constant 1 : index
    %c27_197 = arith.constant 27 : index
    %470 = memref.load %arg2[%c1_196, %c27_197] : memref<4x32xf32, #tpu.memory_space<smem>>
    %c2_198 = arith.constant 2 : index
    %c27_199 = arith.constant 27 : index
    %471 = memref.load %arg2[%c2_198, %c27_199] : memref<4x32xf32, #tpu.memory_space<smem>>
    %c3_200 = arith.constant 3 : index
    %c27_201 = arith.constant 27 : index
    %472 = memref.load %arg2[%c3_200, %c27_201] : memref<4x32xf32, #tpu.memory_space<smem>>
    %473 = vector.broadcast %469 : f32 to vector<8x128xf32>
    %474 = arith.mulf %473, %7 : vector<8x128xf32>
    %475 = vector.broadcast %470 : f32 to vector<8x128xf32>
    %476 = arith.mulf %475, %8 : vector<8x128xf32>
    %477 = arith.addf %474, %476 : vector<8x128xf32>
    %478 = vector.broadcast %471 : f32 to vector<8x128xf32>
    %479 = arith.addf %477, %478 : vector<8x128xf32>
    %480 = arith.truncf %479 : vector<8x128xf32> to vector<8x128xbf16>
    %481 = math.tanh %480 : vector<8x128xbf16>
    %482 = arith.extf %481 : vector<8x128xbf16> to vector<8x128xf32>
    %483 = vector.broadcast %472 : f32 to vector<8x128xf32>
    %484 = arith.mulf %483, %482 : vector<8x128xf32>
    %485 = arith.addf %468, %484 : vector<8x128xf32>
    %c0_202 = arith.constant 0 : index
    %c28 = arith.constant 28 : index
    %486 = memref.load %arg2[%c0_202, %c28] : memref<4x32xf32, #tpu.memory_space<smem>>
    %c1_203 = arith.constant 1 : index
    %c28_204 = arith.constant 28 : index
    %487 = memref.load %arg2[%c1_203, %c28_204] : memref<4x32xf32, #tpu.memory_space<smem>>
    %c2_205 = arith.constant 2 : index
    %c28_206 = arith.constant 28 : index
    %488 = memref.load %arg2[%c2_205, %c28_206] : memref<4x32xf32, #tpu.memory_space<smem>>
    %c3_207 = arith.constant 3 : index
    %c28_208 = arith.constant 28 : index
    %489 = memref.load %arg2[%c3_207, %c28_208] : memref<4x32xf32, #tpu.memory_space<smem>>
    %490 = vector.broadcast %486 : f32 to vector<8x128xf32>
    %491 = arith.mulf %490, %7 : vector<8x128xf32>
    %492 = vector.broadcast %487 : f32 to vector<8x128xf32>
    %493 = arith.mulf %492, %8 : vector<8x128xf32>
    %494 = arith.addf %491, %493 : vector<8x128xf32>
    %495 = vector.broadcast %488 : f32 to vector<8x128xf32>
    %496 = arith.addf %494, %495 : vector<8x128xf32>
    %497 = arith.truncf %496 : vector<8x128xf32> to vector<8x128xbf16>
    %498 = math.tanh %497 : vector<8x128xbf16>
    %499 = arith.extf %498 : vector<8x128xbf16> to vector<8x128xf32>
    %500 = vector.broadcast %489 : f32 to vector<8x128xf32>
    %501 = arith.mulf %500, %499 : vector<8x128xf32>
    %502 = arith.addf %485, %501 : vector<8x128xf32>
    %c0_209 = arith.constant 0 : index
    %c29 = arith.constant 29 : index
    %503 = memref.load %arg2[%c0_209, %c29] : memref<4x32xf32, #tpu.memory_space<smem>>
    %c1_210 = arith.constant 1 : index
    %c29_211 = arith.constant 29 : index
    %504 = memref.load %arg2[%c1_210, %c29_211] : memref<4x32xf32, #tpu.memory_space<smem>>
    %c2_212 = arith.constant 2 : index
    %c29_213 = arith.constant 29 : index
    %505 = memref.load %arg2[%c2_212, %c29_213] : memref<4x32xf32, #tpu.memory_space<smem>>
    %c3_214 = arith.constant 3 : index
    %c29_215 = arith.constant 29 : index
    %506 = memref.load %arg2[%c3_214, %c29_215] : memref<4x32xf32, #tpu.memory_space<smem>>
    %507 = vector.broadcast %503 : f32 to vector<8x128xf32>
    %508 = arith.mulf %507, %7 : vector<8x128xf32>
    %509 = vector.broadcast %504 : f32 to vector<8x128xf32>
    %510 = arith.mulf %509, %8 : vector<8x128xf32>
    %511 = arith.addf %508, %510 : vector<8x128xf32>
    %512 = vector.broadcast %505 : f32 to vector<8x128xf32>
    %513 = arith.addf %511, %512 : vector<8x128xf32>
    %514 = arith.truncf %513 : vector<8x128xf32> to vector<8x128xbf16>
    %515 = math.tanh %514 : vector<8x128xbf16>
    %516 = arith.extf %515 : vector<8x128xbf16> to vector<8x128xf32>
    %517 = vector.broadcast %506 : f32 to vector<8x128xf32>
    %518 = arith.mulf %517, %516 : vector<8x128xf32>
    %519 = arith.addf %502, %518 : vector<8x128xf32>
    %c0_216 = arith.constant 0 : index
    %c30 = arith.constant 30 : index
    %520 = memref.load %arg2[%c0_216, %c30] : memref<4x32xf32, #tpu.memory_space<smem>>
    %c1_217 = arith.constant 1 : index
    %c30_218 = arith.constant 30 : index
    %521 = memref.load %arg2[%c1_217, %c30_218] : memref<4x32xf32, #tpu.memory_space<smem>>
    %c2_219 = arith.constant 2 : index
    %c30_220 = arith.constant 30 : index
    %522 = memref.load %arg2[%c2_219, %c30_220] : memref<4x32xf32, #tpu.memory_space<smem>>
    %c3_221 = arith.constant 3 : index
    %c30_222 = arith.constant 30 : index
    %523 = memref.load %arg2[%c3_221, %c30_222] : memref<4x32xf32, #tpu.memory_space<smem>>
    %524 = vector.broadcast %520 : f32 to vector<8x128xf32>
    %525 = arith.mulf %524, %7 : vector<8x128xf32>
    %526 = vector.broadcast %521 : f32 to vector<8x128xf32>
    %527 = arith.mulf %526, %8 : vector<8x128xf32>
    %528 = arith.addf %525, %527 : vector<8x128xf32>
    %529 = vector.broadcast %522 : f32 to vector<8x128xf32>
    %530 = arith.addf %528, %529 : vector<8x128xf32>
    %531 = arith.truncf %530 : vector<8x128xf32> to vector<8x128xbf16>
    %532 = math.tanh %531 : vector<8x128xbf16>
    %533 = arith.extf %532 : vector<8x128xbf16> to vector<8x128xf32>
    %534 = vector.broadcast %523 : f32 to vector<8x128xf32>
    %535 = arith.mulf %534, %533 : vector<8x128xf32>
    %536 = arith.addf %519, %535 : vector<8x128xf32>
    %c0_223 = arith.constant 0 : index
    %c31 = arith.constant 31 : index
    %537 = memref.load %arg2[%c0_223, %c31] : memref<4x32xf32, #tpu.memory_space<smem>>
    %c1_224 = arith.constant 1 : index
    %c31_225 = arith.constant 31 : index
    %538 = memref.load %arg2[%c1_224, %c31_225] : memref<4x32xf32, #tpu.memory_space<smem>>
    %c2_226 = arith.constant 2 : index
    %c31_227 = arith.constant 31 : index
    %539 = memref.load %arg2[%c2_226, %c31_227] : memref<4x32xf32, #tpu.memory_space<smem>>
    %c3_228 = arith.constant 3 : index
    %c31_229 = arith.constant 31 : index
    %540 = memref.load %arg2[%c3_228, %c31_229] : memref<4x32xf32, #tpu.memory_space<smem>>
    %541 = vector.broadcast %537 : f32 to vector<8x128xf32>
    %542 = arith.mulf %541, %7 : vector<8x128xf32>
    %543 = vector.broadcast %538 : f32 to vector<8x128xf32>
    %544 = arith.mulf %543, %8 : vector<8x128xf32>
    %545 = arith.addf %542, %544 : vector<8x128xf32>
    %546 = vector.broadcast %539 : f32 to vector<8x128xf32>
    %547 = arith.addf %545, %546 : vector<8x128xf32>
    %548 = arith.truncf %547 : vector<8x128xf32> to vector<8x128xbf16>
    %549 = math.tanh %548 : vector<8x128xbf16>
    %550 = arith.extf %549 : vector<8x128xbf16> to vector<8x128xf32>
    %551 = vector.broadcast %540 : f32 to vector<8x128xf32>
    %552 = arith.mulf %551, %550 : vector<8x128xf32>
    %553 = arith.addf %536, %552 : vector<8x128xf32>
    %c0_230 = arith.constant 0 : index
    %c0_231 = arith.constant 0 : index
    %554 = memref.load %arg3[%c0_230, %c0_231] : memref<1x1xf32, #tpu.memory_space<smem>>
    %555 = vector.broadcast %554 : f32 to vector<8x128xf32>
    %556 = arith.addf %553, %555 : vector<8x128xf32>
    %557 = arith.negf %556 : vector<8x128xf32>
    %558 = math.exp %557 : vector<8x128xf32>
    %cst_232 = arith.constant 1.000000e+00 : f32
    %559 = vector.broadcast %cst_232 : f32 to vector<8x128xf32>
    %560 = arith.addf %559, %558 : vector<8x128xf32>
    %561 = arith.divf %559, %560 : vector<8x128xf32>
    %c0_233 = arith.constant 0 : index
    %c0_234 = arith.constant 0 : index
    %562 = vector.load %arg4[%c0_233, %c0_234] : memref<8x128xf32, #tpu.memory_space<vmem>>, vector<8x128xf32>
    tpu.vector_store %arg4[%c0_233, %c0_234], %561 {strides = array<i32>} : memref<8x128xf32, #tpu.memory_space<vmem>>, vector<8x128xf32>,
    return
  }
  func.func @transform_0(%arg0: i32) -> (i32, i32, i32) {
    %c0_i32 = arith.constant 0 : i32
    %c0_i32_0 = arith.constant 0 : i32
    %c0_i32_1 = arith.constant 0 : i32
    return %c0_i32, %arg0, %c0_i32_0 : i32, i32, i32
  }
  func.func @transform_1(%arg0: i32) -> (i32, i32) {
    %c0_i32 = arith.constant 0 : i32
    %c0_i32_0 = arith.constant 0 : i32
    %c0_i32_1 = arith.constant 0 : i32
    return %c0_i32, %c0_i32_0 : i32, i32
  }
  func.func @transform_2(%arg0: i32) -> (i32, i32) {
    %c0_i32 = arith.constant 0 : i32
    %c0_i32_0 = arith.constant 0 : i32
    %c0_i32_1 = arith.constant 0 : i32
    return %c0_i32, %c0_i32_0 : i32, i32
  }
  func.func @transform_3(%arg0: i32) -> (i32, i32) {
    %c0_i32 = arith.constant 0 : i32
    %c0_i32_0 = arith.constant 0 : i32
    return %arg0, %c0_i32 : i32, i32
  }
}

</mosaic_0001>

<bundles_post_ra>
// kernel: polarnet_forward.1
= control target key start
LH: loop header
LB: loop body
LE: loop exit
PB: predicated region body
PF: predicated region fallthrough
CT: control target
= control target key end

     0   :  { %s1651_s0 = inlined_call_operand.vmem [shape: f32[2,8,128], index: 0, kind: input, shape index: {}]   ;;  %s1652_s1 = inlined_call_operand.vmem [shape: f32[4,32], index: 1, kind: input, shape index: {}]   ;;  %s1653_s2 = inlined_call_operand.<no memory space> [shape: f32[1,1], index: 2, kind: input, shape index: {}]   ;;  %s1654_s3 = inlined_call_operand.vmem [shape: f32[8,128], index: 3, kind: output, shape index: {}]  }
   0x1   :  { %1668 = sst [smem:[#allocation19_spill]] %s1653_s2 }
   0x2   :  { %1669 = sst [smem:[#allocation20_spill]] %s1654_s3 }
   0x3   :  { %9 = vsyncpa [#allocation4], 0  ;;  %s17_s14 = sshll.u32 %s1652_s1, 4  ;;  %s960_s15 = smov [#allocation3]   ;;  %s18_s14 = int_to_ptr.vmem [resolvable:$true] %s17_s14 }
   0x4   :  { %20 = dma.vmem_to_smem %s18_s14, 64, %s960_s15, [#allocation4]  }
   0x5   :  { %958 = dma.done.wait [#allocation4], 64  }
   0x6   :  { %959 = vsyncadd [#allocation4], 4294967232 }
   0x7   :  { %27 = sfence }
   0x8   :  { %v989_v0 = vld [vmem:[%s1651_s0] sm:$0xff]  ;;  %v994_v1 = vld [vmem:[%s1651_s0 + $0x8] sm:$0xff]  ;;  %s1010_s0 = sld [smem:[#allocation3]]  ;;  %v961_v47 = vmov 0.0   ;;  %v962_v51 = vmov 0.7853982  }
   0x9   :  { %v997_v2 = vand.u32 2147483647, %v989_v0  ;;  %v1000_v3 = vand.u32 2147483647, %v994_v1  ;;  %v31_v5 = vmul.f32 %v989_v0, %v989_v0  ;;  %v32_v6 = vmul.f32 %v994_v1, %v994_v1  ;;  %s1013_s1 = sld [smem:[#allocation3 + $0x80]] }
   0xa   :  { %s1015_s20 = sld [smem:[#allocation3 + $0x100]]  ;;  %vm93_vm4 = vcmp.ne.f32.partialorder %v989_v0, %v989_v0  ;;  %vm94_vm5 = vcmp.ne.f32.partialorder %v994_v1, %v994_v1  ;;  %vm89_vm12 = vcmp.lt.s32.totalorder %v989_v0, 0  ;;  %vm86_vm13 = vcmp.lt.f32.partialorder %v989_v0, 0.0 }
   0xb   :  { %v49_v4 = vmax.f32 %v997_v2, %v1000_v3  ;;  %v1008_v8 = vadd.f32 %v32_v6, %v31_v5  ;;  %s1017_s21 = sld [smem:[#allocation3 + $0x180]]  ;;  %v48_v15 = vmin.f32 %v997_v2, %v1000_v3  ;;  %vm1067_vm6 = vmor %vm93_vm4, %vm94_vm5  ;;  %vm99_vm7 = vcmp.eq.s32.totalorder %v997_v2, inf }
   0xc   :  { %s1021_s22 = sld [smem:[#allocation3 + $0x1]]  ;;  %vm100_vm8 = vcmp.eq.s32.totalorder %v1000_v3, inf  ;;  %v1126_v48 = vsel %vm89_vm12, 3.1415927, %v961_v47  ;;  %vm83_vm14 = vcmp.gt.f32.partialorder %v1000_v3, %v997_v2  ;;  %v1136_v52 = vsel %vm86_vm13, 2.3561945, %v962_v51 }
   0xd   :  { %874 = vrcp.f32 %v49_v4  ;;  %v61_v10 = vand.u32 2147483648, %v49_v4  ;;  %vm55_vm0 = vweird.f32 %v49_v4  ;;  %v59_v12 = vand.u32 2147483647, %v49_v4  ;;  %s1023_s23 = sld [smem:[#allocation3 + $0x81]]  ;;  %vm1075_vm9 = vmand %vm99_vm7, %vm100_vm8 }
   0xe   :  { %876 = vrsqrt.f32 %v1008_v8  ;;  %s1025_s24 = sld [smem:[#allocation3 + $0x101]]  ;;  %vm41_vm10 = vcmp.eq.f32.partialorder %v1008_v8, inf  ;;  %v44_v41 = vand.u32 2147483648, %v1008_v8  ;;  %vm43_vm11 = vcmp.eq.f32.partialorder %v1008_v8, 0.0 }
   0xf   :  { %v62_v14 = vor.u32 1.1754944e-38, %v61_v10  ;;  %vm60_vm3 = vcmp.eq.f32.partialorder %v59_v12, 8.507059e+37  ;;  %s1027_s25 = sld [smem:[#allocation3 + $0x181]]  ;;  %v110_v49 = vstv %s1010_s0  ;;  %v104_v53 = vand.u32 2147483648, %v994_v1 }
  0x10   :  { %s1031_s26 = sld [smem:[#allocation3 + $0x2]]  ;;  %v112_v55 = vstv %s1013_s1  ;;  %vm91_vm15 = vcmp.eq.f32.partialorder %v994_v1, 0.0  ;;  %v115_v59 = vstv %s1015_s20 }
  0x11   :  { %1670 = sst [smem:[#allocation6_spill]] %s1017_s21 }
  0x12   :  { %s1033_s27 = sld [smem:[#allocation3 + $0x82]]  ;;  %v129_v50 = vstv %s1021_s22 }
  0x13   :  { %v875_v7 = vpop.eup %874  ;;  %s1040_s28 = sld [smem:[#allocation3 + $0x102]]  ;;  %v131_v61 = vstv %s1023_s23 }
  0x14   :  { %v51_v9 = vmul.f32 %v875_v7, %v49_v4  ;;  %vm56_vm1 = vweird.f32 %v875_v7  ;;  %v877_v18 = vpop.eup %876  ;;  %s1042_s29 = sld [smem:[#allocation3 + $0x182]]  ;;  %v134_v63 = vstv %s1025_s24 }
  0x15   :  { %vm57_vm2 = vmor %vm55_vm0, %vm56_vm1  ;;  %1671 = sst [smem:[#allocation7_spill]] %s1027_s25  ;;  %v35_v21 = vmul.f32 %v877_v18, %v1008_v8 }
  0x16   :  { %v52_v11 = vsub.f32 1.0, %v51_v9  ;;  %s1045_s30 = sld [smem:[#allocation3 + $0x3]]  ;;  %v148_v56 = vstv %s1031_s26 }
  0x17   :  { %s1047_s4 = sld [smem:[#allocation3 + $0x83]]  ;;  %v36_v24 = vmul.f32 %v877_v18, %v35_v21 }
  0x18   :  { %v53_v13 = vmul.f32 %v875_v7, %v52_v11  ;;  %s1049_s5 = sld [smem:[#allocation3 + $0x103]]  ;;  %v150_v4 = vstv %s1033_s27 }
  0x19   :  { %1672 = sst [smem:[#allocation8_spill]] %s1040_s28  ;;  %v37_v27 = vmul.f32 0.5, %v36_v24  ;;  %v153_v11 = vstv %s1040_s28 }
  0x1a   :  { %v54_v16 = vadd.f32 %v875_v7, %v53_v13  ;;  %1673 = sst [smem:[#allocation9_spill]] %s1042_s29 }
  0x1b   :  { %s1051_s6 = sld [smem:[#allocation3 + $0x183]]  ;;  %v38_v32 = vsub.f32 1.5, %v37_v27 }
  0x1c   :  { %v58_v17 = vsel %vm57_vm2, %v875_v7, %v54_v16  ;;  %s1054_s7 = sld [smem:[#allocation3 + $0x4]]  ;;  %v167_v57 = vstv %s1045_s30 }
  0x1d   :  { %v63_v19 = vsel %vm60_vm3, %v62_v14, %v58_v17  ;;  %s1056_s8 = sld [smem:[#allocation3 + $0x84]]  ;;  %v39_v35 = vmul.f32 %v877_v18, %v38_v32 }
  0x1e   :  { %v1029_v20 = vmul.f32 %v63_v19, %v48_v15  ;;  %1674 = sst [smem:[#allocation10_spill]] %s1049_s5  ;;  %v172_v14 = vstv %s1049_s5 }
  0x1f   :  { %s1058_s9 = sld [smem:[#allocation3 + $0x104]]  ;;  %v40_v38 = vmul.f32 %v39_v35, %v1008_v8 }
  0x20   :  { %v1038_v22 = vmul.f32 %v1029_v20, %v1029_v20  ;;  %s1064_s10 = sld [smem:[#allocation3 + $0x184]] }
  0x21   :  { %1675 = sst [smem:[#allocation11_spill]] %s1051_s6  ;;  %v42_v42 = vsel %vm41_vm10, %v1008_v8, %v40_v38  ;;  %v169_v8 = vstv %s1047_s4 }
  0x22   :  { %v66_v23 = vmul.f32 0.002785687, %v1038_v22  ;;  %s1073_s11 = sld [smem:[#allocation3 + $0x5]]  ;;  %v1121_v45 = vsel %vm43_vm11, %v44_v41, %v42_v42  ;;  %v186_v5 = vstv %s1054_s7 }
  0x23   :  { %s1079_s12 = sld [smem:[#allocation3 + $0x85]]  ;;  %v1149_v58 = vmul.f32 %v110_v49, %v1121_v45  ;;  %v1153_v60 = vmul.f32 %v129_v50, %v1121_v45  ;;  %v1165_v6 = vmul.f32 %v148_v56, %v1121_v45  ;;  %v1168_v7 = vmul.f32 %v167_v57, %v1121_v45 }
  0x24   :  { %v67_v25 = vadd.f32 -0.015866, %v66_v23  ;;  %s1081_s13 = sld [smem:[#allocation3 + $0x105]]  ;;  %v188_v12 = vstv %s1056_s8  ;;  %v1182_v15 = vmul.f32 %v186_v5, %v1121_v45 }
  0x25   :  { %1676 = sst [smem:[#allocation12_spill]] %s1058_s9  ;;  %v191_v19 = vstv %s1058_s9 }
  0x26   :  { %v68_v26 = vmul.f32 %v67_v25, %v1038_v22  ;;  %1677 = sst [smem:[#allocation13_spill]] %s1064_s10 }
  0x27   :  { %s1083_s14 = sld [smem:[#allocation3 + $0x185]] }
  0x28   :  { %v69_v28 = vadd.f32 0.04247222, %v68_v26  ;;  %s1086_s15 = sld [smem:[#allocation3 + $0x6]]  ;;  %v205_v9 = vstv %s1073_s11 }
  0x29   :  { %s1088_s16 = sld [smem:[#allocation3 + $0x86]]  ;;  %v207_v16 = vstv %s1079_s12 }
  0x2a   :  { %v70_v29 = vmul.f32 %v69_v28, %v1038_v22  ;;  %1682 = sst [smem:[#allocation14_spill]] %s1081_s13 }
  0x2b   :  { %s1090_s17 = sld [smem:[#allocation3 + $0x106]] }
  0x2c   :  { %v71_v33 = vadd.f32 -0.074975304, %v70_v29  ;;  %s1092_s18 = sld [smem:[#allocation3 + $0x7]] }
  0x2d   :  { %1683 = sst [smem:[#allocation15_spill]] %s1083_s14 }
  0x2e   :  { %v72_v34 = vmul.f32 %v71_v33, %v1038_v22  ;;  %s1095_s19 = sld [smem:[#allocation3 + $0x87]]  ;;  %v224_v13 = vstv %s1086_s15 }
  0x2f   :  { %s1097_s3 = sld [smem:[#allocation3 + $0x107]]  ;;  %v1197_v23 = vmul.f32 %v224_v13, %v1121_v45  ;;  %v226_v24 = vstv %s1088_s16 }
  0x30   :  { %v73_v36 = vadd.f32 0.1064488, %v72_v34  ;;  %s1100_s2 = sld [smem:[#allocation3 + $0x8]] }
  0x31   :  { %s1103_s14 = sld [smem:[#allocation3 + $0x88]]  ;;  %v229_v27 = vstv %s1090_s17 }
  0x32   :  { %v74_v37 = vmul.f32 %v73_v36, %v1038_v22  ;;  %s1106_s10 = sld [smem:[#allocation3 + $0x108]]  ;;  %v243_v17 = vstv %s1092_s18 }
  0x33   :  { %s1109_s6 = sld [smem:[#allocation3 + $0x9]]  ;;  %v1208_v28 = vmul.f32 %v243_v17, %v1121_v45 }
  0x34   :  { %v75_v39 = vadd.f32 -0.14207031, %v74_v37  ;;  %s1113_s29 = sld [smem:[#allocation3 + $0x89]]  ;;  %v245_v29 = vstv %s1095_s19 }
  0x35   :  { %s1116_s25 = sld [smem:[#allocation3 + $0x109]]  ;;  %v248_v2 = vstv %s1097_s3 }
  0x36   :  { %v76_v40 = vmul.f32 %v75_v39, %v1038_v22  ;;  %s1119_s21 = sld [smem:[#allocation3 + $0xa]]  ;;  %v262_v21 = vstv %s1100_s2 }
  0x37   :  { %s1145_s0 = sld [smem:[#allocation3 + $0x8b]]  ;;  %v1214_v33 = vmul.f32 %v262_v21, %v1121_v45  ;;  %v264_v34 = vstv %s1103_s14 }
  0x38   :  { %1684 = sst [smem:[#allocation16_spill]] %s1106_s10  ;;  %v77_v43 = vadd.f32 0.19993454, %v76_v40 }
  0x39   :  { %s1124_s10 = sld [smem:[#allocation3 + $0x8a]]  ;;  %v281_v25 = vstv %s1109_s6 }
  0x3a   :  { %v78_v44 = vmul.f32 %v77_v43, %v1038_v22  ;;  %s1156_s22 = sld [smem:[#allocation3 + $0x10b]]  ;;  %v1223_v36 = vmul.f32 %v281_v25, %v1121_v45  ;;  %v283_v37 = vstv %s1113_s29 }
  0x3b   :  { %1685 = sst [smem:[#allocation17_spill]] %s1116_s25 }
  0x3c   :  { %v79_v46 = vadd.f32 -0.33333147, %v78_v44  ;;  %s1130_s25 = sld [smem:[#allocation3 + $0x10a]]  ;;  %v300_v35 = vstv %s1119_s21 }
  0x3d   :  { %s1162_s26 = sld [smem:[#allocation3 + $0xc]]  ;;  %v1238_v44 = vmul.f32 %v300_v35, %v1121_v45  ;;  %v321_v49 = vstv %s1145_s0 }
  0x3e   :  { %v80_v54 = vmul.f32 %v79_v46, %v1038_v22  ;;  %s1172_s30 = sld [smem:[#allocation3 + $0x8c]]  ;;  %v210_v22 = vstv %s1081_s13 }
  0x3f   :  { %1686 = sst [smem:[#allocation18_spill]] %s1124_s10 }
  0x40   :  { %s1139_s10 = sld [smem:[#allocation3 + $0xb]]  ;;  %v81_v62 = vmul.f32 %v80_v54, %v1029_v20 }
  0x41   :  { %s1178_s7 = sld [smem:[#allocation3 + $0x10c]] }
  0x42   :  { %v82_v10 = vadd.f32 %v81_v62, %v1029_v20  ;;  %s1186_s11 = sld [smem:[#allocation3 + $0xd]]  ;;  %v1190_v20 = vmul.f32 %v205_v9, %v1121_v45  ;;  %v305_v51 = vstv %s1130_s25 }
  0x43   :  { %s1193_s15 = sld [smem:[#allocation3 + $0x8d]]  ;;  %v338_v46 = vstv %s1162_s26 }
  0x44   :  { %v84_v18 = vsub.f32 1.5707964, %v82_v10  ;;  %s1687_s5 = sld [smem:[#allocation16_spill]]  ;;  %v340_v56 = vstv %s1172_s30  ;;  %v1256_v62 = vmul.f32 %v338_v46, %v1121_v45 }
  0x45   :  { %s1201_s18 = sld [smem:[#allocation3 + $0xe]] }
  0x46   :  { %v85_v26 = vsel %vm83_vm14, %v84_v18, %v82_v10  ;;  %s1688_s9 = sld [smem:[#allocation6_spill]]  ;;  %v319_v41 = vstv %s1139_s10 }
  0x47   :  { %s1689_s2 = sld [smem:[#allocation18_spill]]  ;;  %v87_v32 = vsub.f32 3.1415927, %v85_v26  ;;  %v1251_v54 = vmul.f32 %v319_v41, %v1121_v45  ;;  %v343_v18 = vstv %s1178_s7 }
  0x48   :  { %s1211_s13 = sld [smem:[#allocation3 + $0x10d]]  ;;  %v357_v50 = vstv %s1186_s11 }
  0x49   :  { %s1690_s28 = sld [smem:[#allocation17_spill]]  ;;  %v88_v38 = vsel %vm86_vm13, %v87_v32, %v85_v26  ;;  %v1262_v9 = vmul.f32 %v357_v50, %v1121_v45  ;;  %v359_v10 = vstv %s1193_s15 }
  0x4a   :  { %s1691_s6 = sld [smem:[#allocation7_spill]]  ;;  %v267_v3 = vstv %s1687_s5  ;;  %v92_v42 = vsel %vm91_vm15, %v1126_v48, %v88_v38 }
  0x4b   :  { %s1218_s16 = sld [smem:[#allocation3 + $0x8e]]  ;;  %v96_v0 = vsel %vm1067_vm6, nan, %v92_v42  ;;  %v376_v5 = vstv %s1201_s18 }
  0x4c   :  { %s1226_s19 = sld [smem:[#allocation3 + $0xf]]  ;;  %v122_v39 = vstv %s1688_s9  ;;  %v102_v48 = vsel %vm1075_vm9, %v1136_v52, %v96_v0  ;;  %v324_v52 = vstv %s1156_s22  ;;  %v1275_v32 = vmul.f32 %v376_v5, %v1121_v45 }
  0x4d   :  { %s1692_s21 = sld [smem:[#allocation9_spill]]  ;;  %v302_v40 = vstv %s1689_s2  ;;  %v103_v30 = vand.u32 2147483647, %v102_v48 }
  0x4e   :  { %s1693_s5 = sld [smem:[#allocation11_spill]]  ;;  %v362_v26 = vstv %s1211_s13 }
  0x4f   :  { %v286_v43 = vstv %s1690_s28  ;;  %s1694_s9 = sld [smem:[#allocation13_spill]]  ;;  %v1267_v13 = vor.u32 %v104_v53, %v103_v30 }
  0x50   :  { %v141_v47 = vstv %s1691_s6  ;;  %s1695_s10 = sld [smem:[#allocation15_spill]] }
  0x51   :  { %v378_v21 = vstv %s1218_s16  ;;  %s1277_s26 = sld [smem:[#allocation3 + $0x8f]]  ;;  %v113_v38 = vmul.f32 %v112_v55, %v1267_v13  ;;  %v132_v1 = vmul.f32 %v131_v61, %v1267_v13  ;;  %v151_v53 = vmul.f32 %v150_v4, %v1267_v13 }
  0x52   :  { %v395_v35 = vstv %s1226_s19  ;;  %v170_v41 = vmul.f32 %v169_v8, %v1267_v13  ;;  %s1292_s11 = sld [smem:[#allocation3 + $0x186]]  ;;  %v189_v42 = vmul.f32 %v188_v12, %v1267_v13  ;;  %v208_v55 = vmul.f32 %v207_v16, %v1267_v13 }
  0x53   :  { %v160_v57 = vstv %s1692_s21  ;;  %v227_v61 = vmul.f32 %v226_v24, %v1267_v13  ;;  %v246_v4 = vmul.f32 %v245_v29, %v1267_v13  ;;  %s1302_s4 = sld [smem:[#allocation3 + $0x10e]]  ;;  %v114_v8 = vadd.f32 %v113_v38, %v1149_v58 }
  0x54   :  { %v179_v31 = vstv %s1693_s5  ;;  %v133_v46 = vadd.f32 %v132_v1, %v1153_v60  ;;  %v152_v12 = vadd.f32 %v151_v53, %v1165_v6  ;;  %v171_v0 = vadd.f32 %v170_v41, %v1168_v7  ;;  %s1326_s8 = sld [smem:[#allocation3 + $0x187]] }
  0x55   :  { %v198_v17 = vstv %s1694_s9  ;;  %v190_v16 = vadd.f32 %v189_v42, %v1182_v15  ;;  %v209_v50 = vadd.f32 %v208_v55, %v1190_v20  ;;  %v228_v24 = vadd.f32 %v227_v61, %v1197_v23  ;;  %s1330_s20 = sld [smem:[#allocation3 + $0x188]] }
  0x56   :  { %v217_v25 = vstv %s1695_s10  ;;  %v247_v29 = vadd.f32 %v246_v4, %v1208_v28  ;;  %v116_v48 = vadd.f32 %v115_v59, %v114_v8  ;;  %v135_v30 = vadd.f32 %v134_v63, %v133_v46  ;;  %s1368_s24 = sld [smem:[#allocation3 + $0x189]] }
  0x57   :  { %v154_v58 = vadd.f32 %v153_v11, %v152_v12  ;;  %v173_v60 = vadd.f32 %v172_v14, %v171_v0  ;;  %v192_v6 = vadd.f32 %v191_v19, %v190_v16  ;;  %v211_v7 = vadd.f32 %v210_v22, %v209_v50  ;;  %s1370_s28 = sld [smem:[#allocation3 + $0x18a]] }
  0x58   :  { %v230_v15 = vadd.f32 %v229_v27, %v228_v24  ;;  %v249_v20 = vadd.f32 %v248_v2, %v247_v29  ;;  %v117_v59 = vpack.c.bf16 %v116_v48, %v116_v48  ;;  %v136_v23 = vpack.c.bf16 %v135_v30, %v135_v30  ;;  %s1374_s29 = sld [smem:[#allocation3 + $0x18b]] }
  0x59   :  { %v155_v63 = vpack.c.bf16 %v154_v58, %v154_v58  ;;  %v174_v28 = vpack.c.bf16 %v173_v60, %v173_v60  ;;  %v193_v5 = vpack.c.bf16 %v192_v6, %v192_v6  ;;  %v212_v11 = vpack.c.bf16 %v211_v7, %v211_v7  ;;  %s1378_s12 = sld [smem:[#allocation3 + $0x18c]] }
  0x5a   :  { %v231_v14 = vpack.c.bf16 %v230_v15, %v230_v15  ;;  %v397_v19 = vstv %s1277_s26  ;;  %v118_v22 = vunpack.c.l.bf16 %v117_v59  ;;  %v137_v27 = vunpack.c.l.bf16 %v136_v23  ;;  %s1382_s14 = sld [smem:[#allocation3 + $0x18d]] }
  0x5b   :  { %v156_v38 = vunpack.c.l.bf16 %v155_v63  ;;  %v250_v1 = vpack.c.bf16 %v249_v20, %v249_v20  ;;  %v175_v2 = vunpack.c.l.bf16 %v174_v28  ;;  %v236_v53 = vstv %s1292_s11  ;;  %s1386_s17 = sld [smem:[#allocation3 + $0x18e]] }
  0x5c   :  { %v381_v41 = vstv %s1302_s4  ;;  %v1336_v42 = vmul.f32 %v395_v35, %v1121_v45  ;;  %878 = vtanh.f32 %v118_v22  ;;  %v194_v55 = vunpack.c.l.bf16 %v193_v5  ;;  %s1390_s0 = sld [smem:[#allocation3 + $0x10f]] }
  0x5d   :  { %v213_v61 = vunpack.c.l.bf16 %v212_v11  ;;  %v265_v4 = vmul.f32 %v264_v34, %v1267_v13  ;;  %880 = vtanh.f32 %v137_v27  ;;  %v232_v8 = vunpack.c.l.bf16 %v231_v14  ;;  %s1396_s22 = sld [smem:[#allocation3 + $0x18f]] }
  0x5e   :  { %v284_v46 = vmul.f32 %v283_v37, %v1267_v13  ;;  %v303_v12 = vmul.f32 %v302_v40, %v1267_v13  ;;  %882 = vtanh.f32 %v156_v38  ;;  %v251_v35 = vunpack.c.l.bf16 %v250_v1  ;;  %s1403_s5 = sld [smem:[#allocation3 + $0x10]] }
  0x5f   :  { %v266_v0 = vadd.f32 %v265_v4, %v1214_v33  ;;  %v322_v16 = vmul.f32 %v321_v49, %v1267_v13  ;;  %884 = vtanh.f32 %v175_v2  ;;  %v255_v34 = vstv %s1326_s8  ;;  %s1406_s30 = sld [smem:[#allocation3 + $0x90]] }
  0x60   :  { %v285_v50 = vadd.f32 %v284_v46, %v1223_v36  ;;  %v304_v24 = vadd.f32 %v303_v12, %v1238_v44  ;;  %886 = vtanh.f32 %v194_v55  ;;  %v341_v29 = vmul.f32 %v340_v56, %v1267_v13  ;;  %s1413_s9 = sld [smem:[#allocation3 + $0x110]] }
  0x61   :  { %v268_v37 = vadd.f32 %v267_v3, %v266_v0  ;;  %v323_v40 = vadd.f32 %v322_v16, %v1251_v54  ;;  %888 = vtanh.f32 %v213_v61  ;;  %v274_v33 = vstv %s1330_s20  ;;  %s1417_s7 = sld [smem:[#allocation3 + $0x190]] }
  0x62   :  { %v287_v48 = vadd.f32 %v286_v43, %v285_v50  ;;  %v306_v49 = vadd.f32 %v305_v51, %v304_v24  ;;  %v879_v30 = vpop.eup %878  ;;  %890 = vtanh.f32 %v232_v8  ;;  %v342_v58 = vadd.f32 %v341_v29, %v1256_v62  ;;  %s1420_s15 = sld [smem:[#allocation3 + $0x11]] }
  0x63   :  { %v269_v36 = vpack.c.bf16 %v268_v37, %v268_v37  ;;  %v325_v44 = vadd.f32 %v324_v52, %v323_v40  ;;  %v881_v3 = vpop.eup %880  ;;  %v120_v60 = vpack.c.bf16 %v879_v30, %v879_v30  ;;  %892 = vtanh.f32 %v251_v35  ;;  %s1425_s2 = sld [smem:[#allocation3 + $0x91]] }
  0x64   :  { %v288_v54 = vpack.c.bf16 %v287_v48, %v287_v48  ;;  %v307_v56 = vpack.c.bf16 %v306_v49, %v306_v49  ;;  %v883_v6 = vpop.eup %882  ;;  %v139_v7 = vpack.c.bf16 %v881_v3, %v881_v3  ;;  %v344_v15 = vadd.f32 %v343_v18, %v342_v58  ;;  %s1433_s13 = sld [smem:[#allocation3 + $0x111]] }
  0x65   :  { %v270_v43 = vunpack.c.l.bf16 %v269_v36  ;;  %v326_v51 = vpack.c.bf16 %v325_v44, %v325_v44  ;;  %v885_v20 = vpop.eup %884  ;;  %v121_v52 = vunpack.c.l.bf16 %v120_v60  ;;  %v158_v59 = vpack.c.bf16 %v883_v6, %v883_v6  ;;  %s1438_s6 = sld [smem:[#allocation3 + $0x12]] }
  0x66   :  { %v289_v62 = vunpack.c.l.bf16 %v288_v54  ;;  %v308_v23 = vunpack.c.l.bf16 %v307_v56  ;;  %v887_v63 = vpop.eup %886  ;;  %v140_v28 = vunpack.c.l.bf16 %v139_v7  ;;  %v177_v5 = vpack.c.bf16 %v885_v20, %v885_v20  ;;  %s1441_s16 = sld [smem:[#allocation3 + $0x191]] }
  0x67   :  { %894 = vtanh.f32 %v270_v43  ;;  %v327_v11 = vunpack.c.l.bf16 %v326_v51  ;;  %v889_v14 = vpop.eup %888  ;;  %v123_v22 = vmul.f32 %v122_v39, %v121_v52  ;;  %v159_v27 = vunpack.c.l.bf16 %v158_v59  ;;  %s1446_s19 = sld [smem:[#allocation3 + $0x92]] }
  0x68   :  { %v196_v38 = vpack.c.bf16 %v887_v63, %v887_v63  ;;  %896 = vtanh.f32 %v289_v62  ;;  %v891_v18 = vpop.eup %890  ;;  %v142_v1 = vmul.f32 %v141_v47, %v140_v28  ;;  %v178_v2 = vunpack.c.l.bf16 %v177_v5  ;;  %s1449_s21 = sld [smem:[#allocation3 + $0x112]] }
  0x69   :  { %v215_v55 = vpack.c.bf16 %v889_v14, %v889_v14  ;;  %898 = vtanh.f32 %v308_v23  ;;  %v893_v61 = vpop.eup %892  ;;  %v161_v4 = vmul.f32 %v160_v57, %v159_v27  ;;  %v234_v8 = vpack.c.bf16 %v891_v18, %v891_v18  ;;  %s1453_s10 = sld [smem:[#allocation3 + $0x13]] }
  0x6a   :  { %v197_v39 = vunpack.c.l.bf16 %v196_v38  ;;  %900 = vtanh.f32 %v327_v11  ;;  %v143_v46 = vadd.f32 %v142_v1, %v123_v22  ;;  %v180_v47 = vmul.f32 %v179_v31, %v178_v2  ;;  %s1456_s26 = sld [smem:[#allocation3 + $0x192]] }
  0x6b   :  { %v216_v12 = vunpack.c.l.bf16 %v215_v55  ;;  %v253_v35 = vpack.c.bf16 %v893_v61, %v893_v61  ;;  %v235_v0 = vunpack.c.l.bf16 %v234_v8  ;;  %v293_v16 = vstv %s1368_s24  ;;  %s1460_s11 = sld [smem:[#allocation3 + $0x93]] }
  0x6c   :  { %v345_v50 = vpack.c.bf16 %v344_v15, %v344_v15  ;;  %v360_v57 = vmul.f32 %v359_v10, %v1267_v13  ;;  %v162_v37 = vadd.f32 %v161_v4, %v143_v46  ;;  %v199_v40 = vmul.f32 %v198_v17, %v197_v39  ;;  %s1463_s18 = sld [smem:[#allocation3 + $0x113]] }
  0x6d   :  { %v895_v24 = vpop.eup %894  ;;  %v218_v31 = vmul.f32 %v217_v25, %v216_v12  ;;  %v312_v29 = vstv %s1370_s28  ;;  %v254_v49 = vunpack.c.l.bf16 %v253_v35  ;;  %v237_v3 = vmul.f32 %v236_v53, %v235_v0  ;;  %s1467_s1 = sld [smem:[#allocation3 + $0x14]] }
  0x6e   :  { %v897_v48 = vpop.eup %896  ;;  %v272_v30 = vpack.c.bf16 %v895_v24, %v895_v24  ;;  %v346_v36 = vunpack.c.l.bf16 %v345_v50  ;;  %v361_v10 = vadd.f32 %v360_v57, %v1262_v9  ;;  %v181_v58 = vadd.f32 %v180_v47, %v162_v37  ;;  %s1470_s23 = sld [smem:[#allocation3 + $0x94]] }
  0x6f   :  { %v899_v44 = vpop.eup %898  ;;  %v291_v17 = vpack.c.bf16 %v897_v48, %v897_v48  ;;  %v379_v25 = vmul.f32 %v378_v21, %v1267_v13  ;;  %v331_v43 = vstv %s1374_s29  ;;  %v350_v51 = vstv %s1378_s12  ;;  %s1474_s27 = sld [smem:[#allocation3 + $0x114]] }
  0x70   :  { %v901_v60 = vpop.eup %900  ;;  %v273_v54 = vunpack.c.l.bf16 %v272_v30  ;;  %v310_v56 = vpack.c.bf16 %v899_v44, %v899_v44  ;;  %902 = vtanh.f32 %v346_v36  ;;  %v363_v9 = vadd.f32 %v362_v26, %v361_v10  ;;  %s1477_s4 = sld [smem:[#allocation3 + $0x15]] }
  0x71   :  { %v200_v53 = vadd.f32 %v199_v40, %v181_v58  ;;  %v292_v6 = vunpack.c.l.bf16 %v291_v17  ;;  %v329_v7 = vpack.c.bf16 %v901_v60, %v901_v60  ;;  %v380_v21 = vadd.f32 %v379_v25, %v1275_v32  ;;  %s1481_s8 = sld [smem:[#allocation3 + $0x95]] }
  0x72   :  { %v364_v15 = vpack.c.bf16 %v363_v9, %v363_v9  ;;  %v369_v20 = vstv %s1382_s14  ;;  %v256_v26 = vmul.f32 %v255_v34, %v254_v49  ;;  %v275_v59 = vmul.f32 %v274_v33, %v273_v54  ;;  %s1485_s20 = sld [smem:[#allocation3 + $0x193]] }
  0x73   :  { %v219_v52 = vadd.f32 %v218_v31, %v200_v53  ;;  %v382_v62 = vadd.f32 %v381_v41, %v380_v21  ;;  %v294_v32 = vmul.f32 %v293_v16, %v292_v6  ;;  %v311_v23 = vunpack.c.l.bf16 %v310_v56  ;;  %s1489_s3 = sld [smem:[#allocation3 + $0x115]] }
  0x74   :  { %v365_v63 = vunpack.c.l.bf16 %v364_v15  ;;  %v398_v28 = vmul.f32 %v397_v19, %v1267_v13  ;;  %v330_v11 = vunpack.c.l.bf16 %v329_v7  ;;  %v400_v34 = vstv %s1390_s0  ;;  %s1492_s24 = sld [smem:[#allocation3 + $0x16]] }
  0x75   :  { %v238_v5 = vadd.f32 %v237_v3, %v219_v52  ;;  %v383_v14 = vpack.c.bf16 %v382_v62, %v382_v62  ;;  %v414_v22 = vstv %s1403_s5  ;;  %v416_v27 = vstv %s1406_s30  ;;  %s1497_s25 = sld [smem:[#allocation3 + $0x96]] }
  0x76   :  { %v903_v33 = vpop.eup %902  ;;  %904 = vtanh.f32 %v365_v63  ;;  %v399_v41 = vadd.f32 %v398_v28, %v1336_v42  ;;  %v415_v1 = vmul.f32 %v414_v22, %v1121_v45  ;;  %v313_v2 = vmul.f32 %v312_v29, %v311_v23  ;;  %s1499_s28 = sld [smem:[#allocation3 + $0x116]] }
  0x77   :  { %v257_v38 = vadd.f32 %v256_v26, %v238_v5  ;;  %v348_v19 = vpack.c.bf16 %v903_v33, %v903_v33  ;;  %v384_v18 = vunpack.c.l.bf16 %v383_v14  ;;  %v417_v61 = vmul.f32 %v416_v27, %v1267_v13  ;;  %s1504_s29 = sld [smem:[#allocation3 + $0x17]] }
  0x78   :  { %v401_v55 = vadd.f32 %v400_v34, %v399_v41  ;;  %v419_v4 = vstv %s1413_s9  ;;  %v433_v8 = vstv %s1420_s15  ;;  %v435_v35 = vstv %s1425_s2  ;;  %s1507_s12 = sld [smem:[#allocation3 + $0x97]] }
  0x79   :  { %v276_v42 = vadd.f32 %v275_v59, %v257_v38  ;;  %v349_v39 = vunpack.c.l.bf16 %v348_v19  ;;  %906 = vtanh.f32 %v384_v18  ;;  %v418_v47 = vadd.f32 %v417_v61, %v415_v1  ;;  %s1510_s14 = sld [smem:[#allocation3 + $0x194]] }
  0x7a   :  { %v402_v46 = vpack.c.bf16 %v401_v55, %v401_v55  ;;  %v434_v12 = vmul.f32 %v433_v8, %v1121_v45  ;;  %v332_v16 = vmul.f32 %v331_v43, %v330_v11  ;;  %v436_v57 = vmul.f32 %v435_v35, %v1267_v13  ;;  %s1517_s0 = sld [smem:[#allocation3 + $0x195]] }
  0x7b   :  { %v295_v0 = vadd.f32 %v294_v32, %v276_v42  ;;  %v351_v50 = vmul.f32 %v350_v51, %v349_v39  ;;  %v420_v40 = vadd.f32 %v419_v4, %v418_v47  ;;  %v438_v31 = vstv %s1433_s13  ;;  %s1526_s5 = sld [smem:[#allocation3 + $0x98]] }
  0x7c   :  { %v905_v24 = vpop.eup %904  ;;  %v403_v37 = vunpack.c.l.bf16 %v402_v46  ;;  %v452_v29 = vstv %s1438_s6  ;;  %v437_v30 = vadd.f32 %v436_v57, %v434_v12  ;;  %v388_v10 = vstv %s1386_s17  ;;  %s1515_s17 = sld [smem:[#allocation3 + $0x117]] }
  0x7d   :  { %v314_v48 = vadd.f32 %v313_v2, %v295_v0  ;;  %v367_v49 = vpack.c.bf16 %v905_v24, %v905_v24  ;;  %v453_v36 = vmul.f32 %v452_v29, %v1121_v45  ;;  %v421_v44 = vpack.c.bf16 %v420_v40, %v420_v40  ;;  %s1530_s30 = sld [smem:[#allocation3 + $0x118]] }
  0x7e   :  { %908 = vtanh.f32 %v403_v37  ;;  %v454_v58 = vstv %s1446_s19  ;;  %v439_v60 = vadd.f32 %v438_v31, %v437_v30  ;;  %v457_v53 = vstv %s1449_s21  ;;  %s1533_s9 = sld [smem:[#allocation3 + $0x19]] }
  0x7f   :  { %v907_v3 = vpop.eup %906  ;;  %v333_v17 = vadd.f32 %v332_v16, %v314_v48  ;;  %v368_v25 = vunpack.c.l.bf16 %v367_v49  ;;  %v455_v54 = vmul.f32 %v454_v58, %v1267_v13  ;;  %v422_v9 = vunpack.c.l.bf16 %v421_v44  ;;  %s1540_s15 = sld [smem:[#allocation3 + $0x196]] }
  0x80   :  { %v386_v56 = vpack.c.bf16 %v907_v3, %v907_v3  ;;  %v471_v6 = vstv %s1453_s10  ;;  %v440_v43 = vpack.c.bf16 %v439_v60, %v439_v60  ;;  %v473_v26 = vstv %s1460_s11  ;;  %s1545_s2 = sld [smem:[#allocation3 + $0x119]] }
  0x81   :  { %v352_v7 = vadd.f32 %v351_v50, %v333_v17  ;;  %v370_v21 = vmul.f32 %v369_v20, %v368_v25  ;;  %v456_v51 = vadd.f32 %v455_v54, %v453_v36  ;;  %910 = vtanh.f32 %v422_v9  ;;  %s1547_s13 = sld [smem:[#allocation3 + $0x197]] }
  0x82   :  { %v387_v15 = vunpack.c.l.bf16 %v386_v56  ;;  %v472_v52 = vmul.f32 %v471_v6, %v1121_v45  ;;  %v441_v62 = vunpack.c.l.bf16 %v440_v43  ;;  %v474_v20 = vmul.f32 %v473_v26, %v1267_v13  ;;  %s1551_s6 = sld [smem:[#allocation3 + $0x1a]] }
  0x83   :  { %v371_v59 = vadd.f32 %v370_v21, %v352_v7  ;;  %v458_v32 = vadd.f32 %v457_v53, %v456_v51  ;;  %v407_v28 = vstv %s1396_s22  ;;  %v476_v5 = vstv %s1463_s18  ;;  %s1523_s22 = sld [smem:[#allocation3 + $0x18]] }
  0x84   :  { %v909_v23 = vpop.eup %908  ;;  %v389_v63 = vmul.f32 %v388_v10, %v387_v15  ;;  %v490_v11 = vstv %s1467_s1  ;;  %912 = vtanh.f32 %v441_v62  ;;  %v475_v33 = vadd.f32 %v474_v20, %v472_v52  ;;  %s1558_s19 = sld [smem:[#allocation3 + $0x11a]] }
  0x85   :  { %v405_v14 = vpack.c.bf16 %v909_v23, %v909_v23  ;;  %v459_v34 = vpack.c.bf16 %v458_v32, %v458_v32  ;;  %v426_v22 = vstv %s1417_s7  ;;  %v491_v27 = vmul.f32 %v490_v11, %v1121_v45  ;;  %s1538_s7 = sld [smem:[#allocation3 + $0x99]] }
  0x86   :  { %v390_v41 = vadd.f32 %v389_v63, %v371_v59  ;;  %v492_v38 = vstv %s1470_s23  ;;  %v477_v1 = vadd.f32 %v476_v5, %v475_v33  ;;  %v445_v61 = vstv %s1441_s16  ;;  %s1554_s16 = sld [smem:[#allocation3 + $0x9a]] }
  0x87   :  { %v406_v19 = vunpack.c.l.bf16 %v405_v14  ;;  %v460_v18 = vunpack.c.l.bf16 %v459_v34  ;;  %v493_v2 = vmul.f32 %v492_v38, %v1267_v13  ;;  %v911_v55 = vpop.eup %910  ;;  %v495_v4 = vstv %s1474_s27  ;;  %s1562_s21 = sld [smem:[#allocation3 + $0x1b]] }
  0x88   :  { %v509_v42 = vstv %s1477_s4  ;;  %v511_v39 = vstv %s1481_s8  ;;  %v424_v46 = vpack.c.bf16 %v911_v55, %v911_v55  ;;  %v478_v47 = vpack.c.bf16 %v477_v1, %v477_v1  ;;  %s1564_s10 = sld [smem:[#allocation3 + $0x198]] }
  0x89   :  { %v408_v8 = vmul.f32 %v407_v28, %v406_v19  ;;  %914 = vtanh.f32 %v460_v18  ;;  %v494_v12 = vadd.f32 %v493_v2, %v491_v27  ;;  %v510_v35 = vmul.f32 %v509_v42, %v1121_v45  ;;  %s1573_s11 = sld [smem:[#allocation3 + $0x11b]] }
  0x8a   :  { %v512_v0 = vmul.f32 %v511_v39, %v1267_v13  ;;  %v514_v16 = vstv %s1489_s3  ;;  %v913_v50 = vpop.eup %912  ;;  %v425_v24 = vunpack.c.l.bf16 %v424_v46  ;;  %v479_v37 = vunpack.c.l.bf16 %v478_v47  ;;  %s1576_s18 = sld [smem:[#allocation3 + $0x1c]] }
  0x8b   :  { %v409_v57 = vadd.f32 %v408_v8, %v390_v41  ;;  %v528_v40 = vstv %s1492_s24  ;;  %v443_v31 = vpack.c.bf16 %v913_v50, %v913_v50  ;;  %v464_v29 = vstv %s1456_s26  ;;  %s1570_s26 = sld [smem:[#allocation3 + $0x9b]] }
  0x8c   :  { %v496_v48 = vadd.f32 %v495_v4, %v494_v12  ;;  %v513_v49 = vadd.f32 %v512_v0, %v510_v35  ;;  %v427_v30 = vmul.f32 %v426_v22, %v425_v24  ;;  %916 = vtanh.f32 %v479_v37  ;;  %s1579_s1 = sld [smem:[#allocation3 + $0x9c]] }
  0x8d   :  { %v529_v36 = vmul.f32 %v528_v40, %v1121_v45  ;;  %v530_v10 = vstv %s1497_s25  ;;  %v444_v44 = vunpack.c.l.bf16 %v443_v31  ;;  %v533_v54 = vstv %s1499_s28  ;;  %s1581_s23 = sld [smem:[#allocation3 + $0x199]] }
  0x8e   :  { %v497_v58 = vpack.c.bf16 %v496_v48, %v496_v48  ;;  %v515_v3 = vadd.f32 %v514_v16, %v513_v49  ;;  %v531_v17 = vmul.f32 %v530_v10, %v1267_v13  ;;  %v428_v60 = vadd.f32 %v427_v30, %v409_v57  ;;  %s1587_s27 = sld [smem:[#allocation3 + $0x11c]] }
  0x8f   :  { %v915_v25 = vpop.eup %914  ;;  %v547_v56 = vstv %s1504_s29  ;;  %v549_v9 = vstv %s1507_s12  ;;  %v446_v53 = vmul.f32 %v445_v61, %v444_v44  ;;  %v552_v52 = vstv %s1515_s17  ;;  %s1591_s4 = sld [smem:[#allocation3 + $0x1d]] }
  0x90   :  { %v462_v6 = vpack.c.bf16 %v915_v25, %v915_v25  ;;  %v498_v7 = vunpack.c.l.bf16 %v497_v58  ;;  %v516_v21 = vpack.c.bf16 %v515_v3, %v515_v3  ;;  %v532_v43 = vadd.f32 %v531_v17, %v529_v36  ;;  %s1594_s8 = sld [smem:[#allocation3 + $0x9d]] }
  0x91   :  { %v548_v51 = vmul.f32 %v547_v56, %v1121_v45  ;;  %v550_v15 = vmul.f32 %v549_v9, %v1267_v13  ;;  %v447_v26 = vadd.f32 %v446_v53, %v428_v60  ;;  %v483_v20 = vstv %s1485_s20  ;;  %s1597_s20 = sld [smem:[#allocation3 + $0x11d]] }
  0x92   :  { %v463_v59 = vunpack.c.l.bf16 %v462_v6  ;;  %918 = vtanh.f32 %v498_v7  ;;  %v517_v62 = vunpack.c.l.bf16 %v516_v21  ;;  %v917_v32 = vpop.eup %916  ;;  %v534_v23 = vadd.f32 %v533_v54, %v532_v43  ;;  %s1601_s3 = sld [smem:[#allocation3 + $0x1e]] }
  0x93   :  { %v551_v63 = vadd.f32 %v550_v15, %v548_v51  ;;  %v566_v28 = vstv %s1523_s22  ;;  %v481_v11 = vpack.c.bf16 %v917_v32, %v917_v32  ;;  %v502_v34 = vstv %s1510_s14  ;;  %s1604_s24 = sld [smem:[#allocation3 + $0x9e]] }
  0x94   :  { %v465_v5 = vmul.f32 %v464_v29, %v463_v59  ;;  %920 = vtanh.f32 %v517_v62  ;;  %v567_v14 = vmul.f32 %v566_v28, %v1121_v45  ;;  %v535_v33 = vpack.c.bf16 %v534_v23, %v534_v23  ;;  %s1608_s25 = sld [smem:[#allocation3 + $0x19a]] }
  0x95   :  { %v553_v41 = vadd.f32 %v552_v52, %v551_v63  ;;  %v568_v22 = vstv %s1526_s5  ;;  %v482_v38 = vunpack.c.l.bf16 %v481_v11  ;;  %v571_v18 = vstv %s1530_s30  ;;  %s1614_s28 = sld [smem:[#allocation3 + $0x11e]] }
  0x96   :  { %v466_v27 = vadd.f32 %v465_v5, %v447_v26  ;;  %v569_v19 = vmul.f32 %v568_v22, %v1267_v13  ;;  %v536_v1 = vunpack.c.l.bf16 %v535_v33  ;;  %v585_v55 = vstv %s1533_s9  ;;  %s1617_s29 = sld [smem:[#allocation3 + $0x1f]] }
  0x97   :  { %v554_v2 = vpack.c.bf16 %v553_v41, %v553_v41  ;;  %v587_v61 = vstv %s1538_s7  ;;  %v484_v42 = vmul.f32 %v483_v20, %v482_v38  ;;  %v586_v8 = vmul.f32 %v585_v55, %v1121_v45  ;;  %s1620_s12 = sld [smem:[#allocation3 + $0x9f]] }
  0x98   :  { %v919_v4 = vpop.eup %918  ;;  %v570_v39 = vadd.f32 %v569_v19, %v567_v14  ;;  %v588_v46 = vmul.f32 %v587_v61, %v1267_v13  ;;  %922 = vtanh.f32 %v536_v1  ;;  %v590_v35 = vstv %s1545_s2  ;;  %s1625_s14 = sld [smem:[#allocation3 + $0x11f]] }
  0x99   :  { %v500_v47 = vpack.c.bf16 %v919_v4, %v919_v4  ;;  %v555_v12 = vunpack.c.l.bf16 %v554_v2  ;;  %v485_v16 = vadd.f32 %v484_v42, %v466_v27  ;;  %v521_v50 = vstv %s1517_s0  ;;  %s1630_s17 = sld [smem:[#allocation3 + $0x19b]] }
  0x9a   :  { %v921_v0 = vpop.eup %920  ;;  %v572_v57 = vadd.f32 %v571_v18, %v570_v39  ;;  %v589_v24 = vadd.f32 %v588_v46, %v586_v8  ;;  %v604_v31 = vstv %s1551_s6  ;;  %v606_v30 = vstv %s1554_s16  ;;  %s1635_s0 = sld [smem:[#allocation3 + $0x19c]] }
  0x9b   :  { %v501_v37 = vunpack.c.l.bf16 %v500_v47  ;;  %v519_v40 = vpack.c.bf16 %v921_v0, %v921_v0  ;;  %924 = vtanh.f32 %v555_v12  ;;  %v605_v49 = vmul.f32 %v604_v31, %v1121_v45  ;;  %s861_s22 = sld [smem:[#allocation3 + $0x19d]] }
  0x9c   :  { %v573_v29 = vpack.c.bf16 %v572_v57, %v572_v57  ;;  %v591_v48 = vadd.f32 %v590_v35, %v589_v24  ;;  %v540_v44 = vstv %s1540_s15  ;;  %v607_v58 = vmul.f32 %v606_v30, %v1267_v13  ;;  %s865_s5 = sld [smem:[#allocation3 + $0x19e]] }
  0x9d   :  { %v503_v36 = vmul.f32 %v502_v34, %v501_v37  ;;  %v520_v10 = vunpack.c.l.bf16 %v519_v40  ;;  %v609_v25 = vstv %s1558_s19  ;;  %v623_v60 = vstv %s1562_s21  ;;  %s869_s30 = sld [smem:[#allocation3 + $0x19f]] }
  0x9e   :  { %v574_v3 = vunpack.c.l.bf16 %v573_v29  ;;  %v592_v17 = vpack.c.bf16 %v591_v48, %v591_v48  ;;  %v923_v54 = vpop.eup %922  ;;  %v608_v53 = vadd.f32 %v607_v58, %v605_v49  ;;  %v624_v6 = vmul.f32 %v623_v60, %v1121_v45  ;;  %s1702_s15 = sld [smem:[#allocation19_spill]] }
  0x9f   :  { %v504_v56 = vadd.f32 %v503_v36, %v485_v16  ;;  %v522_v9 = vmul.f32 %v521_v50, %v520_v10  ;;  %v538_v7 = vpack.c.bf16 %v923_v54, %v923_v54  ;;  %v625_v43 = vstv %s1570_s26  ;;  %s1703_s6 = sld [smem:[#allocation20_spill]] }
  0xa0   :  { %926 = vtanh.f32 %v574_v3  ;;  %v593_v21 = vunpack.c.l.bf16 %v592_v17  ;;  %v559_v52 = vstv %s1547_s13  ;;  %v610_v26 = vadd.f32 %v609_v25, %v608_v53 }
  0xa1   :  { %v925_v51 = vpop.eup %924  ;;  %v523_v15 = vadd.f32 %v522_v9, %v504_v56  ;;  %v626_v59 = vmul.f32 %v625_v43, %v1267_v13  ;;  %v539_v62 = vunpack.c.l.bf16 %v538_v7  ;;  %v628_v20 = vstv %s1573_s11 }
  0xa2   :  { %v557_v32 = vpack.c.bf16 %v925_v51, %v925_v51  ;;  %928 = vtanh.f32 %v593_v21  ;;  %v611_v23 = vpack.c.bf16 %v610_v26, %v610_v26  ;;  %v642_v28 = vstv %s1576_s18 }
  0xa3   :  { %v627_v63 = vadd.f32 %v626_v59, %v624_v6  ;;  %v644_v5 = vstv %s1579_s1  ;;  %v541_v11 = vmul.f32 %v540_v44, %v539_v62  ;;  %v643_v34 = vmul.f32 %v642_v28, %v1121_v45 }
  0xa4   :  { %v558_v14 = vunpack.c.l.bf16 %v557_v32  ;;  %v645_v33 = vmul.f32 %v644_v5, %v1267_v13  ;;  %v578_v41 = vstv %s1564_s10  ;;  %v612_v22 = vunpack.c.l.bf16 %v611_v23 }
  0xa5   :  { %v629_v27 = vadd.f32 %v628_v20, %v627_v63  ;;  %v647_v38 = vstv %s1587_s27  ;;  %v542_v18 = vadd.f32 %v541_v11, %v523_v15  ;;  %v661_v55 = vstv %s1591_s4 }
  0xa6   :  { %v927_v19 = vpop.eup %926  ;;  %v560_v1 = vmul.f32 %v559_v52, %v558_v14  ;;  %v646_v2 = vadd.f32 %v645_v33, %v643_v34  ;;  %930 = vtanh.f32 %v612_v22  ;;  %v662_v42 = vmul.f32 %v661_v55, %v1121_v45 }
  0xa7   :  { %v576_v61 = vpack.c.bf16 %v927_v19, %v927_v19  ;;  %v630_v4 = vpack.c.bf16 %v629_v27, %v629_v27  ;;  %v597_v46 = vstv %s1581_s23  ;;  %v663_v12 = vstv %s1594_s8 }
  0xa8   :  { %v929_v39 = vpop.eup %928  ;;  %v561_v8 = vadd.f32 %v560_v1, %v542_v18  ;;  %v648_v47 = vadd.f32 %v647_v38, %v646_v2  ;;  %v664_v50 = vmul.f32 %v663_v12, %v1267_v13  ;;  %v666_v24 = vstv %s1597_s20 }
  0xa9   :  { %v577_v35 = vunpack.c.l.bf16 %v576_v61  ;;  %v595_v0 = vpack.c.bf16 %v929_v39, %v929_v39  ;;  %v631_v16 = vunpack.c.l.bf16 %v630_v4  ;;  %v680_v37 = vstv %s1601_s3 }
  0xaa   :  { %v649_v57 = vpack.c.bf16 %v648_v47, %v648_v47  ;;  %v682_v40 = vstv %s1604_s24  ;;  %v665_v48 = vadd.f32 %v664_v50, %v662_v42  ;;  %v681_v30 = vmul.f32 %v680_v37, %v1121_v45 }
  0xab   :  { %v579_v31 = vmul.f32 %v578_v41, %v577_v35  ;;  %v596_v29 = vunpack.c.l.bf16 %v595_v0  ;;  %932 = vtanh.f32 %v631_v16  ;;  %v683_v36 = vmul.f32 %v682_v40, %v1267_v13 }
  0xac   :  { %v650_v49 = vunpack.c.l.bf16 %v649_v57  ;;  %v931_v10 = vpop.eup %930  ;;  %v667_v3 = vadd.f32 %v666_v24, %v665_v48  ;;  %v685_v17 = vstv %s1614_s28  ;;  %v699_v54 = vstv %s1617_s29 }
  0xad   :  { %v580_v44 = vadd.f32 %v579_v31, %v561_v8  ;;  %v598_v58 = vmul.f32 %v597_v46, %v596_v29  ;;  %v614_v25 = vpack.c.bf16 %v931_v10, %v931_v10  ;;  %v684_v60 = vadd.f32 %v683_v36, %v681_v30 }
  0xae   :  { %934 = vtanh.f32 %v650_v49  ;;  %v616_v56 = vstv %s1608_s25  ;;  %v668_v9 = vpack.c.bf16 %v667_v3, %v667_v3  ;;  %v700_v53 = vmul.f32 %v699_v54, %v1121_v45 }
  0xaf   :  { %v701_v6 = vstv %s1620_s12  ;;  %v599_v7 = vadd.f32 %v598_v58, %v580_v44  ;;  %v615_v21 = vunpack.c.l.bf16 %v614_v25  ;;  %v686_v43 = vadd.f32 %v685_v17, %v684_v60 }
  0xb0   :  { %v702_v51 = vmul.f32 %v701_v6, %v1267_v13  ;;  %v669_v52 = vunpack.c.l.bf16 %v668_v9  ;;  %v704_v26 = vstv %s1625_s14  ;;  %v635_v23 = vstv %s1630_s17 }
  0xb1   :  { %v933_v15 = vpop.eup %932  ;;  %v617_v59 = vmul.f32 %v616_v56, %v615_v21  ;;  %v687_v32 = vpack.c.bf16 %v686_v43, %v686_v43  ;;  %v654_v33 = vstv %s1635_s0  ;;  %v673_v1 = vstv %s861_s22 }
  0xb2   :  { %v633_v62 = vpack.c.bf16 %v933_v15, %v933_v15  ;;  %v703_v20 = vadd.f32 %v702_v51, %v700_v53  ;;  %936 = vtanh.f32 %v669_v52  ;;  %v692_v39 = vstv %s865_s5 }
  0xb3   :  { %v618_v28 = vadd.f32 %v617_v59, %v599_v7  ;;  %v688_v5 = vunpack.c.l.bf16 %v687_v32  ;;  %v711_v0 = vstv %s869_s30  ;;  %v715_v24 = vstv %s1702_s15 }
  0xb4   :  { %v935_v63 = vpop.eup %934  ;;  %v634_v45 = vunpack.c.l.bf16 %v633_v62  ;;  %v705_v11 = vadd.f32 %v704_v26, %v703_v20 }
  0xb5   :  { %v652_v14 = vpack.c.bf16 %v935_v63, %v935_v63  ;;  %938 = vtanh.f32 %v688_v5 }
  0xb6   :  { %v636_v34 = vmul.f32 %v635_v23, %v634_v45  ;;  %v706_v13 = vpack.c.bf16 %v705_v11, %v705_v11 }
  0xb7   :  { %v653_v41 = vunpack.c.l.bf16 %v652_v14 }
  0xb8   :  { %v637_v22 = vadd.f32 %v636_v34, %v618_v28  ;;  %v707_v27 = vunpack.c.l.bf16 %v706_v13  ;;  %v937_v38 = vpop.eup %936 }
  0xb9   :  { %v655_v19 = vmul.f32 %v654_v33, %v653_v41  ;;  %v671_v18 = vpack.c.bf16 %v937_v38, %v937_v38 }
  0xba   :  { %940 = vtanh.f32 %v707_v27 }
  0xbb   :  { %v939_v2 = vpop.eup %938  ;;  %v656_v55 = vadd.f32 %v655_v19, %v637_v22  ;;  %v672_v61 = vunpack.c.l.bf16 %v671_v18 }
  0xbc   :  { %v690_v4 = vpack.c.bf16 %v939_v2, %v939_v2 }
  0xbd   :  { %v674_v42 = vmul.f32 %v673_v1, %v672_v61 }
  0xbe   :  { %v691_v8 = vunpack.c.l.bf16 %v690_v4 }
  0xbf   :  { %v675_v47 = vadd.f32 %v674_v42, %v656_v55 }
  0xc0   :  { %v941_v46 = vpop.eup %940  ;;  %v693_v12 = vmul.f32 %v692_v39, %v691_v8 }
  0xc1   :  { %v709_v35 = vpack.c.bf16 %v941_v46, %v941_v46 }
  0xc2   :  { %v694_v16 = vadd.f32 %v693_v12, %v675_v47 }
  0xc3   :  { %v710_v50 = vunpack.c.l.bf16 %v709_v35 }
  0xc5   :  { %v712_v57 = vmul.f32 %v711_v0, %v710_v50 }
  0xc7   :  { %v713_v37 = vadd.f32 %v712_v57, %v694_v16 }
  0xc9   :  { %v716_v40 = vadd.f32 %v715_v24, %v713_v37 }
  0xcb   :  { %v870_v31 = vmul.f32 -1.442695, %v716_v40 }
  0xcd   :  { %942 = vpow2.f32 %v870_v31 }
  0xd3   :  { %v943_v29 = vpop.eup %942 }
  0xd4   :  { %v720_v48 = vadd.f32 1.0, %v943_v29 }
  0xd6   :  { %944 = vrcp.f32 %v720_v48  ;;  %v732_v36 = vand.u32 2147483648, %v720_v48  ;;  %vm726_vm0 = vweird.f32 %v720_v48  ;;  %v730_v44 = vand.u32 2147483647, %v720_v48 }
  0xd8   :  { %v733_v3 = vor.u32 1.1754944e-38, %v732_v36  ;;  %vm731_vm3 = vcmp.eq.f32.partialorder %v730_v44, 8.507059e+37 }
  0xdc   :  { %v945_v49 = vpop.eup %944 }
  0xdd   :  { %v722_v30 = vmul.f32 %v945_v49, %v720_v48  ;;  %vm727_vm1 = vweird.f32 %v945_v49 }
  0xde   :  { %vm728_vm2 = vmor %vm726_vm0, %vm727_vm1 }
  0xdf   :  { %v723_v10 = vsub.f32 1.0, %v722_v30 }
  0xe1   :  { %v724_v58 = vmul.f32 %v945_v49, %v723_v10 }
  0xe3   :  { %v725_v17 = vadd.f32 %v945_v49, %v724_v58 }
  0xe5   :  { %v729_v25 = vsel %vm728_vm2, %v945_v49, %v725_v17 }
  0xe6   :  { %v734_v60 = vsel %vm731_vm3, %v733_v3, %v729_v25 }
  0xe7   :  { %736 = vst [vmem:[%s1703_s6] sm:$0xff] %v734_v60 }
  0xe8   :  { %741 = vsyncpa [#allocation4], 1 }

</bundles_post_ra>
